<compile_context>
chip_gen: v7x
topology: tpu7x:2x2x1
jax: 0.10.0
libtpu: 0.0.40
codegen_flags: <defaults>
</compile_context>

<pallas_src>
import numpy as np
import jax
import jax.numpy as jnp
from jax.experimental import pallas as pl
from jax.experimental.pallas import tpu as pltpu

V = 369            # vertices (hard-coded by the module: x.view(-1, 1, 369))
V_PAD = 384        # pad vertices to a multiple of 128 for TPU lane tiling
B = 2              # batch
K = 3              # Chebyshev order (K_list[0])
FIN1, FOUT1 = 1, 64
FIN2, FOUT2 = 64, 128
NUM_CLASSES = 2


# ---------------------------------------------------------------------------
# Fused Pallas kernel (one grid step == one batch sample)
# ---------------------------------------------------------------------------
def smallchebnet_kernel(lt_ref, x_ref, w1_ref, w2_ref, wc_ref, b_ref,
                        o_ref, ys_ref):
    f32 = jnp.float32
    bf16 = jnp.bfloat16
    # lt_ref = [L^T | T2(L)^T]  (V_PAD, 2*V_PAD) bf16, stationary across steps.

    # ---- ChebConv 1 (Fin=1 -> 64) + ReLU --------------------------------
    z0 = x_ref[0]                                                 # (1, V_PAD) f32
    # T1 and T2 bases from ONE wide matmul (no serial Chebyshev recursion).
    z12 = jnp.dot(z0.astype(bf16), lt_ref[...],
                  preferred_element_type=f32)                     # (1, 2*V_PAD)
    z1 = z12[:, :V_PAD]
    z2 = z12[:, V_PAD:]
    # Fin=1, K=3: the Chebyshev "Linear" is 3 broadcasted rank-1 updates (VPU).
    h1 = w1_ref[0] * z0 + w1_ref[1] * z1 + w1_ref[2] * z2         # (64, V_PAD)
    h1 = jnp.maximum(h1, 0.0)

    # ---- ChebConv 2 (64 -> 128) + ReLU ----------------------------------
    h1b = h1.astype(bf16)
    y12 = jnp.dot(h1b, lt_ref[...], preferred_element_type=f32)   # (64, 2*V_PAD)
    # Stack the K bases (k-major rows) into the bf16 VMEM scratch, cast once.
    ys_ref[0:FOUT1, :] = h1b                                      # T0 basis
    ys_ref[FOUT1:2 * FOUT1, :] = y12[:, :V_PAD].astype(bf16)      # T1 basis
    ys_ref[2 * FOUT1:3 * FOUT1, :] = y12[:, V_PAD:].astype(bf16)  # T2 basis
    h2 = jnp.dot(w2_ref[...], ys_ref[...],
                 preferred_element_type=f32)                      # (128, V_PAD)
    h2 = jnp.maximum(h2, 0.0)

    # ---- classifier: per-class Frobenius product in h2's native layout ---
    s0 = jnp.sum(h2 * wc_ref[0])                                  # f32 scalar
    s1 = jnp.sum(h2 * wc_ref[1])
    logits = jnp.concatenate(
        [jnp.reshape(s0, (1, 1, 1)), jnp.reshape(s1, (1, 1, 1))], axis=2)
    o_ref[...] = logits + b_ref[...]                              # (1, 1, C)


def smallchebnet_pallas(xp, LtLt2, w1, w2r, wc, b3d):
    return pl.pallas_call(
        smallchebnet_kernel,
        out_shape=jax.ShapeDtypeStruct((B, 1, NUM_CLASSES), jnp.float32),
        grid_spec=pltpu.PrefetchScalarGridSpec(
            num_scalar_prefetch=0,
            grid=(B,),
            in_specs=[
                pl.BlockSpec((V_PAD, 2 * V_PAD), lambda b: (0, 0)),        # [L^T|T2^T]
                pl.BlockSpec((1, 1, V_PAD), lambda b: (b, 0, 0)),          # x (sample b)
                pl.BlockSpec((K, FOUT1, 1), lambda b: (0, 0, 0)),          # W1 per-k cols
                pl.BlockSpec((FOUT2, K * FIN2), lambda b: (0, 0)),         # W2 (k-major)
                pl.BlockSpec((NUM_CLASSES, FOUT2, V_PAD), lambda b: (0, 0, 0)),  # W_cls
                pl.BlockSpec((1, 1, NUM_CLASSES), lambda b: (0, 0, 0)),    # bias
            ],
            out_specs=pl.BlockSpec((1, 1, NUM_CLASSES), lambda b: (b, 0, 0)),
            scratch_shapes=[pltpu.VMEM((K * FIN2, V_PAD), jnp.bfloat16)],  # Ys stack
        ),
        compiler_params=pltpu.CompilerParams(
            dimension_semantics=("parallel",)),
    )(LtLt2, xp, w1, w2r, wc, b3d)


@jax.jit
def smallchebnet_forward(x, LtLt2, w1, w2r, wc, b3d):
    # x.view(-1, 1, 369); dropout1/dropout2 are eval-mode identities.
    # TODO(synk): training-mode nn.Dropout(0.1) RNG masking is not implemented.
    xb = x.reshape(B, V)
    xb = jnp.pad(xb, ((0, 0), (0, V_PAD - V))).reshape(B, 1, V_PAD)
    out = smallchebnet_pallas(xb, LtLt2, w1, w2r, wc, b3d)
    return out.reshape(B, NUM_CLASSES)


# ---------------------------------------------------------------------------
# Host-side parameter / graph construction
# ---------------------------------------------------------------------------
def make_rescaled_laplacian(v):
    """Synthetic ring-graph normalized Laplacian, rescaled L' = 2 L / lmax - I
    (the effect of lmax_L / rescale_L in the reference)."""
    A = np.zeros((v, v), np.float64)
    idx = np.arange(v)
    A[idx, (idx + 1) % v] = 1.0
    A[(idx + 1) % v, idx] = 1.0
    d = A.sum(1)
    dinv = 1.0 / np.sqrt(d)
    Ln = np.eye(v) - dinv[:, None] * A * dinv[None, :]
    lmax = float(np.linalg.eigvalsh(Ln).max())
    Lr = 2.0 * Ln / lmax - np.eye(v)
    return Lr.astype(np.float32)


def reference_forward(x, L369, W1, W2, W_lin, b_lin):
    """Pure-JAX reimplementation of SmallChebNet.forward (eval mode)."""
    def chebconv(xin, W, fin, fout):
        xp = jnp.transpose(xin, (0, 2, 1))                       # (B, V, fin)
        x0 = jnp.transpose(xp, (1, 2, 0)).reshape(V, fin * B)    # [v, fin*B + b]
        xs = [x0]
        if K > 1:
            xs.append(L369 @ x0)
            for _ in range(2, K):
                xs.append(2.0 * (L369 @ xs[-1]) - xs[-2])
        xk = jnp.stack(xs, axis=0)                               # (K, V, fin*B)
        xk = xk.reshape(K, V, fin, B).transpose(3, 1, 2, 0).reshape(B * V, fin * K)
        y = xk @ W.T
        return jnp.transpose(y.reshape(B, V, fout), (0, 2, 1))   # (B, fout, V)

    h1 = jax.nn.relu(chebconv(x.reshape(B, 1, V), W1, FIN1, FOUT1))
    h2 = jax.nn.relu(chebconv(h1, W2, FIN2, FOUT2))
    feat = h2.reshape(B, FOUT2 * V)
    return feat @ W_lin.T + b_lin[None, :]


if __name__ == "__main__":
    key = jax.random.PRNGKey(0)
    k_w1, k_w2, k_wl, k_bl, k_x = jax.random.split(key, 5)

    # Rescaled Laplacian (bf16-rounded once) and precomputed T2(L) = 2 L^2 - I.
    L_f32 = make_rescaled_laplacian(V)
    L_bf = np.asarray(jnp.asarray(L_f32).astype(jnp.bfloat16).astype(jnp.float32))
    T2 = (2.0 * (L_bf @ L_bf) - np.eye(V, dtype=np.float32)).astype(np.float32)

    Lt_pad = np.zeros((V_PAD, V_PAD), np.float32)
    Lt_pad[:V, :V] = L_bf.T
    Lt2_pad = np.zeros((V_PAD, V_PAD), np.float32)
    Lt2_pad[:V, :V] = T2.T
    LtLt2 = jnp.asarray(np.concatenate([Lt_pad, Lt2_pad], axis=1)).astype(jnp.bfloat16)

    # ChebConv weights: uniform(-s, s), s = sqrt(2/(Fin+Fout)) (as in reference).
    s1 = np.sqrt(2.0 / (FIN1 + FOUT1))
    W1 = jax.random.uniform(k_w1, (FOUT1, K * FIN1), jnp.float32, -s1, s1)
    W1r = W1.astype(jnp.bfloat16).astype(jnp.float32)
    s2 = np.sqrt(2.0 / (FIN2 + FOUT2))
    W2 = jax.random.uniform(k_w2, (FOUT2, K * FIN2), jnp.float32, -s2, s2)
    W2r = W2.astype(jnp.bfloat16).astype(jnp.float32)

    # W1 as per-k (Fout, 1) columns (layer 1 is pure VPU rank-1 updates).
    w1_pk = jnp.transpose(W1r, (1, 0)).reshape(K, FOUT1, 1)
    # W2 reordered so its contraction axis is (k, fin) -- matches the Ys stack.
    w2_kmaj = jnp.transpose(W2r.reshape(FOUT2, FIN2, K), (0, 2, 1)).reshape(
        FOUT2, K * FIN2).astype(jnp.bfloat16)

    # Classifier nn.Linear(128*369, 2): default PyTorch init, weight pre-permuted
    # to (C, FOUT2, V_PAD) so the kernel consumes h2's native lane-dense layout.
    bound = 1.0 / np.sqrt(FOUT2 * V)
    W_lin = jax.random.uniform(k_wl, (NUM_CLASSES, FOUT2 * V), jnp.float32,
                               -bound, bound)
    W_lin_r = W_lin.astype(jnp.bfloat16).astype(jnp.float32)
    b_lin = jax.random.uniform(k_bl, (NUM_CLASSES,), jnp.float32, -bound, bound)
    wc = jnp.pad(W_lin_r.reshape(NUM_CLASSES, FOUT2, V),
                 ((0, 0), (0, 0), (0, V_PAD - V))).astype(jnp.bfloat16)
    b3d = b_lin.reshape(1, 1, NUM_CLASSES)

    x = jax.random.normal(k_x, (B, 1, V), jnp.float32)

    logits = smallchebnet_forward(x, LtLt2, w1_pk, w2_kmaj, wc, b3d)
    logits = jax.block_until_ready(logits)

    assert logits.shape == (B, NUM_CLASSES)
    assert bool(jnp.all(jnp.isfinite(logits)))

    # Cross-check against a pure-JAX PyTorch-semantics reference using the same
    # bf16-rounded parameters (f32 math); only in-kernel activation casts differ.
    ref = reference_forward(x, jnp.asarray(L_bf), W1r, W2r, W_lin_r, b_lin)
    np.testing.assert_allclose(np.asarray(logits), np.asarray(ref),
                               rtol=5e-2, atol=5e-2)

    print("KERNEL_OK")
</pallas_src>

<mosaic_0001>
module attributes {stable_mosaic.version = 11 : i64} {
  func.func @smallchebnet_kernel(%arg0: i32, %arg1: memref<384x768xbf16, #tpu.memory_space<vmem>>, %arg2: memref<1x1x384xf32, #tpu.memory_space<vmem>>, %arg3: memref<3x64x1xf32, #tpu.memory_space<vmem>>, %arg4: memref<128x192xbf16, #tpu.memory_space<vmem>>, %arg5: memref<2x128x384xbf16, #tpu.memory_space<vmem>>, %arg6: memref<1x1x2xf32, #tpu.memory_space<vmem>>, %arg7: memref<1x1x2xf32, #tpu.memory_space<vmem>>, %arg8: memref<192x384xbf16, #tpu.memory_space<vmem>>) attributes {dimension_semantics = [#tpu.dimension_semantics<parallel>], iteration_bounds = array<i64: 2>, scalar_prefetch = 0 : i64, scratch_operands = 1 : i64, tpu.core_type = #tpu.core_type<tc>, window_params = [{pipeline_mode = #tpu.pipeline_mode<synchronous>, transform_indices = @transform_0, window_bounds = array<i64: 384, 768>}, {transform_indices = @transform_1, window_bounds = array<i64: 1, 1, 384>}, {pipeline_mode = #tpu.pipeline_mode<synchronous>, transform_indices = @transform_2, window_bounds = array<i64: 3, 64, 1>}, {pipeline_mode = #tpu.pipeline_mode<synchronous>, transform_indices = @transform_3, window_bounds = array<i64: 128, 192>}, {pipeline_mode = #tpu.pipeline_mode<synchronous>, transform_indices = @transform_4, window_bounds = array<i64: 2, 128, 384>}, {pipeline_mode = #tpu.pipeline_mode<synchronous>, transform_indices = @transform_5, window_bounds = array<i64: 1, 1, 2>}, {transform_indices = @transform_6, window_bounds = array<i64: 1, 1, 2>}]} {
    %c0 = arith.constant 0 : index
    %c0_0 = arith.constant 0 : index
    %c0_1 = arith.constant 0 : index
    %0 = vector.load %arg2[%c0, %c0_0, %c0_1] : memref<1x1x384xf32, #tpu.memory_space<vmem>>, vector<1x1x384xf32>
    %1 = vector.shape_cast %0 : vector<1x1x384xf32> to vector<1x384xf32>
    %2 = arith.truncf %1 : vector<1x384xf32> to vector<1x384xbf16>
    %c0_2 = arith.constant 0 : index
    %c0_3 = arith.constant 0 : index
    %3 = vector.load %arg1[%c0_2, %c0_3] : memref<384x768xbf16, #tpu.memory_space<vmem>>, vector<384x768xbf16>
    %cst = arith.constant dense<0.000000e+00> : vector<1x768xf32>
    %4 = tpu.matmul %2, %3, %cst {dimension_numbers = #tpu.dot_dimension_numbers<[1], [0], [0], [1], [0, 0, 1, 1], [], []>} : vector<1x384xbf16>, vector<384x768xbf16>, vector<1x768xf32> -> vector<1x768xf32>
    %5 = vector.extract_strided_slice %4 {offsets = [0, 0], sizes = [1, 384], strides = [1, 1]} : vector<1x768xf32> to vector<1x384xf32>
    %6 = vector.extract_strided_slice %4 {offsets = [0, 384], sizes = [1, 384], strides = [1, 1]} : vector<1x768xf32> to vector<1x384xf32>
    %c0_4 = arith.constant 0 : index
    %c0_5 = arith.constant 0 : index
    %c0_6 = arith.constant 0 : index
    %7 = vector.load %arg3[%c0_4, %c0_5, %c0_6] : memref<3x64x1xf32, #tpu.memory_space<vmem>>, vector<1x64x1xf32>
    %8 = vector.shape_cast %7 : vector<1x64x1xf32> to vector<64x1xf32>
    %9 = vector.broadcast %8 : vector<64x1xf32> to vector<64x384xf32>
    %10 = vector.broadcast %1 : vector<1x384xf32> to vector<64x384xf32>
    %11 = arith.mulf %9, %10 : vector<64x384xf32>
    %c1 = arith.constant 1 : index
    %c0_7 = arith.constant 0 : index
    %c0_8 = arith.constant 0 : index
    %12 = vector.load %arg3[%c1, %c0_7, %c0_8] : memref<3x64x1xf32, #tpu.memory_space<vmem>>, vector<1x64x1xf32>
    %13 = vector.shape_cast %12 : vector<1x64x1xf32> to vector<64x1xf32>
    %14 = vector.broadcast %13 : vector<64x1xf32> to vector<64x384xf32>
    %15 = vector.broadcast %5 : vector<1x384xf32> to vector<64x384xf32>
    %16 = arith.mulf %14, %15 : vector<64x384xf32>
    %17 = arith.addf %11, %16 : vector<64x384xf32>
    %c2 = arith.constant 2 : index
    %c0_9 = arith.constant 0 : index
    %c0_10 = arith.constant 0 : index
    %18 = vector.load %arg3[%c2, %c0_9, %c0_10] : memref<3x64x1xf32, #tpu.memory_space<vmem>>, vector<1x64x1xf32>
    %19 = vector.shape_cast %18 : vector<1x64x1xf32> to vector<64x1xf32>
    %20 = vector.broadcast %19 : vector<64x1xf32> to vector<64x384xf32>
    %21 = vector.broadcast %6 : vector<1x384xf32> to vector<64x384xf32>
    %22 = arith.mulf %20, %21 : vector<64x384xf32>
    %23 = arith.addf %17, %22 : vector<64x384xf32>
    %cst_11 = arith.constant 0.000000e+00 : f32
    %24 = vector.broadcast %cst_11 : f32 to vector<64x384xf32>
    %25 = arith.maximumf %23, %24 : vector<64x384xf32>
    %26 = arith.truncf %25 : vector<64x384xf32> to vector<64x384xbf16>
    %c0_12 = arith.constant 0 : index
    %c0_13 = arith.constant 0 : index
    %27 = vector.load %arg1[%c0_12, %c0_13] : memref<384x768xbf16, #tpu.memory_space<vmem>>, vector<384x768xbf16>
    %cst_14 = arith.constant dense<0.000000e+00> : vector<64x768xf32>
    %28 = tpu.matmul %26, %27, %cst_14 {dimension_numbers = #tpu.dot_dimension_numbers<[1], [0], [0], [1], [0, 0, 1, 1], [], []>} : vector<64x384xbf16>, vector<384x768xbf16>, vector<64x768xf32> -> vector<64x768xf32>
    %c0_15 = arith.constant 0 : index
    %c0_16 = arith.constant 0 : index
    %29 = vector.load %arg8[%c0_15, %c0_16] : memref<192x384xbf16, #tpu.memory_space<vmem>>, vector<64x384xbf16>
    tpu.vector_store %arg8[%c0_15, %c0_16], %26 {strides = array<i32>} : memref<192x384xbf16, #tpu.memory_space<vmem>>, vector<64x384xbf16>,
    %30 = vector.extract_strided_slice %28 {offsets = [0, 0], sizes = [64, 384], strides = [1, 1]} : vector<64x768xf32> to vector<64x384xf32>
    %31 = arith.truncf %30 : vector<64x384xf32> to vector<64x384xbf16>
    %c64 = arith.constant 64 : index
    %c0_17 = arith.constant 0 : index
    %32 = vector.load %arg8[%c64, %c0_17] : memref<192x384xbf16, #tpu.memory_space<vmem>>, vector<64x384xbf16>
    tpu.vector_store %arg8[%c64, %c0_17], %31 {strides = array<i32>} : memref<192x384xbf16, #tpu.memory_space<vmem>>, vector<64x384xbf16>,
    %33 = vector.extract_strided_slice %28 {offsets = [0, 384], sizes = [64, 384], strides = [1, 1]} : vector<64x768xf32> to vector<64x384xf32>
    %34 = arith.truncf %33 : vector<64x384xf32> to vector<64x384xbf16>
    %c128 = arith.constant 128 : index
    %c0_18 = arith.constant 0 : index
    %35 = vector.load %arg8[%c128, %c0_18] : memref<192x384xbf16, #tpu.memory_space<vmem>>, vector<64x384xbf16>
    tpu.vector_store %arg8[%c128, %c0_18], %34 {strides = array<i32>} : memref<192x384xbf16, #tpu.memory_space<vmem>>, vector<64x384xbf16>,
    %c0_19 = arith.constant 0 : index
    %c0_20 = arith.constant 0 : index
    %36 = vector.load %arg4[%c0_19, %c0_20] : memref<128x192xbf16, #tpu.memory_space<vmem>>, vector<128x192xbf16>
    %c0_21 = arith.constant 0 : index
    %c0_22 = arith.constant 0 : index
    %37 = vector.load %arg8[%c0_21, %c0_22] : memref<192x384xbf16, #tpu.memory_space<vmem>>, vector<192x384xbf16>
    %cst_23 = arith.constant dense<0.000000e+00> : vector<128x384xf32>
    %38 = tpu.matmul %36, %37, %cst_23 {dimension_numbers = #tpu.dot_dimension_numbers<[1], [0], [0], [1], [0, 0, 1, 1], [], []>} : vector<128x192xbf16>, vector<192x384xbf16>, vector<128x384xf32> -> vector<128x384xf32>
    %cst_24 = arith.constant 0.000000e+00 : f32
    %39 = vector.broadcast %cst_24 : f32 to vector<128x384xf32>
    %40 = arith.maximumf %38, %39 : vector<128x384xf32>
    %c0_25 = arith.constant 0 : index
    %c0_26 = arith.constant 0 : index
    %c0_27 = arith.constant 0 : index
    %41 = vector.load %arg5[%c0_25, %c0_26, %c0_27] : memref<2x128x384xbf16, #tpu.memory_space<vmem>>, vector<1x128x384xbf16>
    %42 = vector.shape_cast %41 : vector<1x128x384xbf16> to vector<128x384xbf16>
    %43 = arith.extf %42 : vector<128x384xbf16> to vector<128x384xf32>
    %44 = arith.mulf %40, %43 : vector<128x384xf32>
    %45 = vector.shape_cast %44 : vector<128x384xf32> to vector<1x128x384xf32>
    %cst_28 = arith.constant dense<0.000000e+00> : vector<1xf32>
    %46 = vector.multi_reduction <add>, %45, %cst_28 [1, 2] : vector<1x128x384xf32> to vector<1xf32>
    %47 = vector.shape_cast %46 : vector<1xf32> to vector<1x1x1xf32>
    %48 = vector.extract %47[0, 0, 0] : f32 from vector<1x1x1xf32>
    %c1_29 = arith.constant 1 : index
    %c0_30 = arith.constant 0 : index
    %c0_31 = arith.constant 0 : index
    %49 = vector.load %arg5[%c1_29, %c0_30, %c0_31] : memref<2x128x384xbf16, #tpu.memory_space<vmem>>, vector<1x128x384xbf16>
    %50 = vector.shape_cast %49 : vector<1x128x384xbf16> to vector<128x384xbf16>
    %51 = arith.extf %50 : vector<128x384xbf16> to vector<128x384xf32>
    %52 = arith.mulf %40, %51 : vector<128x384xf32>
    %53 = vector.shape_cast %52 : vector<128x384xf32> to vector<1x128x384xf32>
    %cst_32 = arith.constant dense<0.000000e+00> : vector<1xf32>
    %54 = vector.multi_reduction <add>, %53, %cst_32 [1, 2] : vector<1x128x384xf32> to vector<1xf32>
    %55 = vector.shape_cast %54 : vector<1xf32> to vector<1x1x1xf32>
    %56 = vector.extract %55[0, 0, 0] : f32 from vector<1x1x1xf32>
    %57 = vector.broadcast %48 : f32 to vector<1x1x1xf32>
    %58 = vector.broadcast %56 : f32 to vector<1x1x1xf32>
    %59 = tpu.concatenate %57, %58 in 2 : vector<1x1x1xf32>, vector<1x1x1xf32> -> vector<1x1x2xf32>
    %c0_33 = arith.constant 0 : index
    %c0_34 = arith.constant 0 : index
    %c0_35 = arith.constant 0 : index
    %60 = vector.load %arg6[%c0_33, %c0_34, %c0_35] : memref<1x1x2xf32, #tpu.memory_space<vmem>>, vector<1x1x2xf32>
    %61 = arith.addf %59, %60 : vector<1x1x2xf32>
    %c0_36 = arith.constant 0 : index
    %c0_37 = arith.constant 0 : index
    %c0_38 = arith.constant 0 : index
    %62 = vector.load %arg7[%c0_36, %c0_37, %c0_38] : memref<1x1x2xf32, #tpu.memory_space<vmem>>, vector<1x1x2xf32>
    tpu.vector_store %arg7[%c0_36, %c0_37, %c0_38], %61 {strides = array<i32>} : memref<1x1x2xf32, #tpu.memory_space<vmem>>, vector<1x1x2xf32>,
    return
  }
  func.func @transform_0(%arg0: i32) -> (i32, i32) {
    %c0_i32 = arith.constant 0 : i32
    %c0_i32_0 = arith.constant 0 : i32
    %c0_i32_1 = arith.constant 0 : i32
    return %c0_i32, %c0_i32_0 : i32, i32
  }
  func.func @transform_1(%arg0: i32) -> (i32, i32, i32) {
    %c0_i32 = arith.constant 0 : i32
    %c0_i32_0 = arith.constant 0 : i32
    %c0_i32_1 = arith.constant 0 : i32
    return %arg0, %c0_i32, %c0_i32_0 : i32, i32, i32
  }
  func.func @transform_2(%arg0: i32) -> (i32, i32, i32) {
    %c0_i32 = arith.constant 0 : i32
    %c0_i32_0 = arith.constant 0 : i32
    %c0_i32_1 = arith.constant 0 : i32
    %c0_i32_2 = arith.constant 0 : i32
    return %c0_i32, %c0_i32_0, %c0_i32_1 : i32, i32, i32
  }
  func.func @transform_3(%arg0: i32) -> (i32, i32) {
    %c0_i32 = arith.constant 0 : i32
    %c0_i32_0 = arith.constant 0 : i32
    %c0_i32_1 = arith.constant 0 : i32
    return %c0_i32, %c0_i32_0 : i32, i32
  }
  func.func @transform_4(%arg0: i32) -> (i32, i32, i32) {
    %c0_i32 = arith.constant 0 : i32
    %c0_i32_0 = arith.constant 0 : i32
    %c0_i32_1 = arith.constant 0 : i32
    %c0_i32_2 = arith.constant 0 : i32
    return %c0_i32, %c0_i32_0, %c0_i32_1 : i32, i32, i32
  }
  func.func @transform_5(%arg0: i32) -> (i32, i32, i32) {
    %c0_i32 = arith.constant 0 : i32
    %c0_i32_0 = arith.constant 0 : i32
    %c0_i32_1 = arith.constant 0 : i32
    %c0_i32_2 = arith.constant 0 : i32
    return %c0_i32, %c0_i32_0, %c0_i32_1 : i32, i32, i32
  }
  func.func @transform_6(%arg0: i32) -> (i32, i32, i32) {
    %c0_i32 = arith.constant 0 : i32
    %c0_i32_0 = arith.constant 0 : i32
    %c0_i32_1 = arith.constant 0 : i32
    return %arg0, %c0_i32, %c0_i32_0 : i32, i32, i32
  }
}

</mosaic_0001>

<bundles_post_ra>
// kernel: smallchebnet_forward.1
= control target key start
LH: loop header
LB: loop body
LE: loop exit
PB: predicated region body
PF: predicated region fallthrough
CT: control target
= control target key end

     0   :  { %11 = vsyncpa [#allocation4], 0  ;;  %s5180_s0 = inlined_call_operand.hbm [shape: bf16[384,768], index: 0, kind: input, shape index: {}]   ;;  %s5181_s1 = inlined_call_operand.vmem [shape: f32[2,1,384], index: 1, kind: input, shape index: {}]   ;;  %s5182_s2 = inlined_call_operand.vmem [shape: f32[3,64,1], index: 2, kind: input, shape index: {}]   ;;  %s5183_s3 = inlined_call_operand.vmem [shape: bf16[128,192], index: 3, kind: input, shape index: {}]   ;;  %s5184_s4 = inlined_call_operand.vmem [shape: bf16[2,128,384], index: 4, kind: input, shape index: {}]   ;;  %s5185_s5 = inlined_call_operand.vmem [shape: f32[1,1,2], index: 5, kind: input, shape index: {}]   ;;  %s5186_s6 = inlined_call_operand.hbm [shape: f32[2,1,2], index: 6, kind: output, shape index: {}]  }
   0x1   :  { %12 = vsyncpa [#allocation5], 0 }
   0x2   :  { %14 = vsyncpa [#allocation5 + $0x1], 0  ;;  %s3836_s21 = smov 0   ;;  %s3838_s22 = smov 0  }
   0x3   :  { %s3840_s23 = smov 0   ;;  %s3842_s24 = smov 0  }
   0x4 LB: > { %s3857_s25 = sadd.s32 4294967295, %s3794_s24   ;;  %s3080_s26 = sadd.s32 4294967294, %s3794_s24   ;;  %s3794_s24 = sphi %s3842_s24, %s5429_s24   ;;  %s3790_s23 = sphi %s3840_s23, %s5428_s23   ;;  %s3786_s22 = sphi %s3838_s22, %s5427_s22   ;;  %s3782_s21 = sphi %s3836_s21, %s5426_s21  }
   0x5   : > { %s3861_s27 = sadd.s32 1, %s3794_s24   ;;  %s158_s28 = sadd.s32 1, %s3790_s23 }
   0x6   : > { %s155_s29 = ssub.s32 %s3794_s24, %s3861_s27  ;;  %p168_p0 = scmp.ne.s32.totalorder %s3790_s23, %s3786_s22 }
   0x7   : > { %p156_p1 = scmp.eq.s32.totalorder %s155_s29, 0  ;;  %p169_p2 = scmp.eq.s32.totalorder %s3857_s25, 1 }
   0x8   : > { %p174_p3 = scmp.ne.s32.totalorder %s3786_s22, %s3782_s21  ;;  %p175_p4 = scmp.eq.s32.totalorder %s3080_s26, 1 }
   0x9   : > { %s3872_s30 = scalar_select %p156_p1, %s3790_s23, %s158_s28  }
   0xa   : > { %p3874_p5 = por %p169_p2, %p168_p0  ;;  %p3878_p6 = por %p175_p4, %p174_p3 }
   0xb   : > { %p3081_p7 = scmp.ge.s32.totalorder %s3794_s24, 1  ;;  %p182_p8 = scmp.lt.s32.totalorder %s3794_s24, 3 }
   0xc   : > { %s5269_s7 = scalar_select %p3874_p5, 1, 0 }
   0xd   : > { %s5270_s8 = scalar_select %p3878_p6, 1, 0 }
   0xe   : > { %p5187_p9 = scmp.eq.s32.totalorder %s3857_s25, 0  ;;  %p3885_p10 = pnand %p3081_p7, %p182_p8 }
   0xf   : > { %s3796_s10 = smov [#allocation3]   ;;  %s3700_s15 = scalar_lea.hbm %s5180_s0, 18432 }
  0x10   : > { %s5271_s9 = scalar_select %p3885_p10, 1, 0 }
  0x11   : > { %s194_s11 = sshll.u32 %s3796_s10, 4  ;;  %p3384_p11 = pneg %p3885_p10  ;;  %s195_s11 = int_to_ptr.vmem [resolvable:$true] %s194_s11 }
  0x12   : > { %p3701_p13 = scmp.ne.s32.totalorder %s5180_s0, %s3700_s15  ;;  %p3707_p3 = scmp.lt.u32.totalorder %s3700_s15, %s5180_s0 }
  0x13   : > { %p3893_p12 = pnand %p5187_p9, %p3384_p11 }
  0x15   : > { %p3702_p0 = pneg %p3893_p12 }
  0x17   : > { %p3703_p1 = pnand %p3702_p0, %p3701_p13 }
  0x19   : > { %p3704_p2 = pneg %p3703_p1 }
  0x1b   : > { %p3709_p4 = pnand %p3707_p3, %p3704_p2 }
  0x1d   : > { %3712 = shalt.err (!%p3709_p4)
}
  0x1e   : > { %s3713_s20 = scalar_lea.vmem %s195_s11, 18432  ;;  %p3721_p9 = scmp.lt.s32.totalorder %s195_s11, %s195_s11 }
  0x1f   : > { %p3714_p7 = scmp.ne.s32.totalorder %s195_s11, %s3713_s20  ;;  %p3722_p6 = scmp.lt.s32.totalorder %s3713_s20, %s3713_s20 }
  0x21   : > { %p3716_p8 = pnand %p3714_p7, %p3702_p0  ;;  %p3723_p5 = por %p3722_p6, %p3721_p9 }
  0x23   : > { %p3717_p11 = pneg %p3716_p8 }
  0x25   : > { %p3724_p10 = pnand %p3723_p5, %p3717_p11 }
  0x27   : > { %3727 = shalt.err (!%p3724_p10)
}
  0x28   : > { %s3797_s26 = smov 384   ;;  %s3798_s28 = smov 24  }
  0x29   : > { %3387 = dma.hbm_to_vmem [thread:$0]  (!%p3893_p12), %s5180_s0, 18432, %s195_s11, [#allocation4], %s3797_s26, %s3797_s26, %s3798_s28  }
  0x2a   : > { %p5273_p13 = scmp.ne.s32.totalorder %s5271_s9, 0 }
  0x2c   : > { %229 = sbr.rel (%p5273_p13) target bundleno = 1377 (0x561), region = 44 }
  0x33   : > { %p5274_p1 = scmp.eq.s32.totalorder %s3857_s25, 0 }
  0x35   : > { %3773 = dma.done.wait (%p5274_p1), [#allocation4], 18432   ;;  %p5275_p0 = pmov %p5274_p1 }
  0x36   : > { %v5190_v0 = vmov 0   ;;  %v3921_v1 = vld [vmem:[#allocation3 + $0x4] ss:$24 sps:$4 sm:$0xff]   ;;  %v3923_v2 = vld [vmem:[#allocation3] ss:$24 sps:$4 sm:$0xff]   ;;  %p257_p5 = scmp.lt.s32.totalorder %s3857_s25, 1  ;;  %v264_v36 = vlaneseq }
  0x37   : > { %3775 = vsyncadd (%p5275_p0), [#allocation4], 4294948864  ;;  %3432 = vset.pattern.permute.xlu1 %v5190_v0  ;;  %3431 = vset.pattern.permute.xlu0 %v5190_v0  ;;  %v3436_v3 = vld [vmem:[#allocation3 + $0xc] ss:$24 sps:$4 sm:$0xff]   ;;  %v3438_v4 = vld [vmem:[#allocation3 + $0x8] ss:$24 sps:$4 sm:$0xff]  }
  0x38   : > { %1146 = vmatprep.subr.bf16.mxu0 %v3921_v1  ;;  %v3927_v5 = vld [vmem:[#allocation3 + $0x34] ss:$24 sps:$4 sm:$0xff]   ;;  %v3929_v6 = vld [vmem:[#allocation3 + $0x30] ss:$24 sps:$4 sm:$0xff]   ;;  %1228 = vmatprep.subr.bf16.mxu1 %v3436_v3  ;;  %v3932_v9 = vld [vmem:[#allocation3 + $0x64] ss:$24 sps:$4 sm:$0xff]  }
  0x39   : > { %1147 = vmatpush1.bf16.msra.mxu0 %v3923_v2  ;;  %v3442_v7 = vld [vmem:[#allocation3 + $0x3c] ss:$24 sps:$4 sm:$0xff]   ;;  %1229 = vmatpush1.bf16.msra.mxu1 %v3438_v4  ;;  %v3444_v8 = vld [vmem:[#allocation3 + $0x38] ss:$24 sps:$4 sm:$0xff]   ;;  %v3448_v11 = vld [vmem:[#allocation3 + $0x6c] ss:$24 sps:$4 sm:$0xff]  }
  0x3a   : > { %1148 = vmatprep.subr.bf16.mxu0 %v3927_v5  ;;  %1230 = vmatprep.subr.bf16.mxu1 %v3442_v7  ;;  %v3935_v10 = vld [vmem:[#allocation3 + $0x60] ss:$24 sps:$4 sm:$0xff]   ;;  %v3938_v12 = vld [vmem:[#allocation3 + $0x94] ss:$24 sps:$4 sm:$0xff]   ;;  %v3941_v15 = vld [vmem:[#allocation3 + $0x90] ss:$24 sps:$4 sm:$0xff]  }
  0x3b   : > { %v3450_v13 = vld [vmem:[#allocation3 + $0x68] ss:$24 sps:$4 sm:$0xff]   ;;  %v3454_v14 = vld [vmem:[#allocation3 + $0x9c] ss:$24 sps:$4 sm:$0xff]   ;;  %v3456_v17 = vld [vmem:[#allocation3 + $0x98] ss:$24 sps:$4 sm:$0xff]  }
  0x3c   : > { %v3944_v16 = vld [vmem:[#allocation3 + $0xc4] ss:$24 sps:$4 sm:$0xff]   ;;  %v3947_v19 = vld [vmem:[#allocation3 + $0xc0] ss:$24 sps:$4 sm:$0xff]   ;;  %v3950_v20 = vld [vmem:[#allocation3 + $0xf4] ss:$24 sps:$4 sm:$0xff]  }
  0x3d   : > { %1149 = vmatpush1.bf16.msra.mxu0 %v3929_v6  ;;  %1231 = vmatpush1.bf16.msra.mxu1 %v3444_v8  ;;  %v3460_v18 = vld [vmem:[#allocation3 + $0xcc] ss:$24 sps:$4 sm:$0xff]   ;;  %v3952_v21 = vld [vmem:[#allocation3 + $0xc8] ss:$24 sps:$4 sm:$0xff]   ;;  %v3954_v22 = vld [vmem:[#allocation3 + $0xfc] ss:$24 sps:$4 sm:$0xff]  }
  0x3e   : > { %1150 = vmatprep.subr.bf16.mxu0 %v3932_v9  ;;  %1232 = vmatprep.subr.bf16.mxu1 %v3448_v11  ;;  %v3957_v23 = vld [vmem:[#allocation3 + $0xf0] ss:$24 sps:$4 sm:$0xff]   ;;  %v3960_v24 = vld [vmem:[#allocation3 + $0x124] ss:$24 sps:$4 sm:$0xff]   ;;  %v3969_v27 = vld [vmem:[#allocation3 + $0x120] ss:$24 sps:$4 sm:$0xff]  }
  0x3f   : > { %v3963_v25 = vld [vmem:[#allocation3 + $0xf8] ss:$24 sps:$4 sm:$0xff]   ;;  %v3966_v26 = vld [vmem:[#allocation3 + $0x12c] ss:$24 sps:$4 sm:$0xff]   ;;  %v3975_v29 = vld [vmem:[#allocation3 + $0x128] ss:$24 sps:$4 sm:$0xff]  }
  0x40   : > { %v3972_v28 = vld [vmem:[#allocation3 + $0x154] ss:$24 sps:$4 sm:$0xff]   ;;  %v3981_v31 = vld [vmem:[#allocation3 + $0x150] ss:$24 sps:$4 sm:$0xff]   ;;  %v3985_v32 = vld [vmem:[#allocation3 + $0x184] ss:$24 sps:$4 sm:$0xff]  }
  0x41   : > { %1151 = vmatpush1.bf16.msra.mxu0 %v3935_v10  ;;  %1233 = vmatpush1.bf16.msra.mxu1 %v3450_v13  ;;  %v3978_v30 = vld [vmem:[#allocation3 + $0x15c] ss:$24 sps:$4 sm:$0xff]   ;;  %v3988_v33 = vld [vmem:[#allocation3 + $0x158] ss:$24 sps:$4 sm:$0xff]   ;;  %v3991_v34 = vld [vmem:[#allocation3 + $0x18c] ss:$24 sps:$4 sm:$0xff]  }
  0x42   : > { %1152 = vmatprep.subr.bf16.mxu0 %v3938_v12  ;;  %1234 = vmatprep.subr.bf16.mxu1 %v3454_v14  ;;  %v3994_v35 = vld [vmem:[#allocation3 + $0x180] ss:$24 sps:$4 sm:$0xff]   ;;  %s258_s9 = scalar_select %p257_p5, %s3857_s25, 1  ;;  %v3998_v37 = vld [vmem:[#allocation3 + $0x1b4] ss:$24 sps:$4 sm:$0xff]   ;;  %v4009_v41 = vshrl.u32 %v264_v36, 7 }
  0x43   : > { %v4001_v38 = vld [vmem:[#allocation3 + $0x188] ss:$24 sps:$4 sm:$0xff]   ;;  %v4004_v39 = vld [vmem:[#allocation3 + $0x1bc] ss:$24 sps:$4 sm:$0xff]   ;;  %v4015_v43 = vld [vmem:[#allocation3 + $0x1b8] ss:$24 sps:$4 sm:$0xff]  }
  0x44   : > { %v4007_v40 = vld [vmem:[#allocation3 + $0x1b0] ss:$24 sps:$4 sm:$0xff]   ;;  %s3373_s11 = smul.u32 3, %s258_s9  ;;  %v4012_v42 = vld [vmem:[#allocation3 + $0x1e4] ss:$24 sps:$4 sm:$0xff]   ;;  %v270_v46 = vsub.s32 1, %v4009_v41 }
  0x45   : > { %1153 = vmatpush1.bf16.msra.mxu0 %v3941_v15  ;;  %1235 = vmatpush1.bf16.msra.mxu1 %v3456_v17  ;;  %v4018_v44 = vld [vmem:[#allocation3 + $0x1ec] ss:$24 sps:$4 sm:$0xff]   ;;  %v4021_v45 = vld [vmem:[#allocation3 + $0x1e0] ss:$24 sps:$4 sm:$0xff]   ;;  %v4034_v49 = vld [vmem:[#allocation3 + $0x21c] ss:$24 sps:$4 sm:$0xff]  }
  0x46   : > { %1154 = vmatprep.subr.bf16.mxu0 %v3944_v16  ;;  %1236 = vmatprep.subr.bf16.mxu1 %v3460_v18  ;;  %s260_s14 = scalar_lea.vmem %s5181_s1, %s3373_s11  ;;  %v4028_v47 = vld [vmem:[#allocation3 + $0x214] ss:$24 sps:$4 sm:$0xff]   ;;  %v4031_v48 = vld [vmem:[#allocation3 + $0x1e8] ss:$24 sps:$4 sm:$0xff]   ;;  %5277 = vst [vmem:[#allocation10_spill] sm:$0xff] %v4034_v49  ;;  %v4084_v4 = vsub.s32 0, %v4009_v41 }
  0x47   : > { %5276 = vst [vmem:[#allocation9_spill] sm:$0xff] %v4031_v48  ;;  %v4036_v50 = vld [vmem:[%s260_s14] sm:$0x7]  ;;  %v4039_v51 = vld [vmem:[#allocation3 + $0x210] ss:$24 sps:$4 sm:$0xff]   ;;  %vm2340_vm0 = vcmask 523264  }
  0x48   : > { %v4042_v52 = vrot.slane %v4036_v50, %v270_v46  ;;  %v4045_v53 = vld [vmem:[#allocation3 + $0x244] ss:$24 sps:$4 sm:$0xff]   ;;  %v4048_v54 = vld [vmem:[#allocation3 + $0x218] ss:$24 sps:$4 sm:$0xff]   ;;  %v4062_v58 = vld [vmem:[#allocation3 + $0x274] ss:$24 sps:$4 sm:$0xff]   ;;  %v4100_v14 = vrot.slane %v4036_v50, %v4084_v4 }
  0x49   : > { %1155 = vmatpush1.bf16.msra.mxu0 %v3947_v19  ;;  %1237 = vmatpush1.bf16.msra.mxu1 %v3952_v21  ;;  %5279 = vst [vmem:[#allocation12_spill] sm:$0xff] %v4048_v54  ;;  %v4055_v56 = vld [vmem:[#allocation3 + $0x24c] ss:$24 sps:$4 sm:$0xff]   ;;  %v4058_v57 = vld [vmem:[#allocation3 + $0x240] ss:$24 sps:$4 sm:$0xff]   ;;  %5285 = vst [vmem:[#allocation18_spill] sm:$0xff] %v4084_v4 }
  0x4a   : > { %1156 = vmatprep.subr.bf16.mxu0 %v3950_v20  ;;  %1238 = vmatprep.subr.bf16.mxu1 %v3954_v22  ;;  %5278 = vst [vmem:[#allocation11_spill] sm:$0xff] %v4042_v52  ;;  %v4052_v55 = vpack.c.bf16 %v4042_v52, %v4042_v52  ;;  %5280 = vst [vmem:[#allocation13_spill] sm:$0xff] %v4055_v56  ;;  %v4066_v59 = vld [vmem:[#allocation3 + $0x248] ss:$24 sps:$4 sm:$0xff]   ;;  %v4069_v60 = vld [vmem:[#allocation3 + $0x27c] ss:$24 sps:$4 sm:$0xff]   ;;  %v4114_v46 = vpack.c.bf16 %v4100_v14, %v4100_v14 }
  0x4b   : > { %5281 = vst [vmem:[#allocation14_spill] sm:$0xff] %v4066_v59  ;;  %5282 = vst [vmem:[#allocation15_spill] sm:$0xff] %v4069_v60  ;;  %v4072_v61 = vld [vmem:[#allocation3 + $0x270] ss:$24 sps:$4 sm:$0xff]   ;;  %v4075_v62 = vld [vmem:[#allocation3 + $0x2a4] ss:$24 sps:$4 sm:$0xff]  }
  0x4c   : > { %1178 = vmatprep.mubr.bf16.mxu0 %v4052_v55  ;;  %1260 = vmatprep.mubr.bf16.mxu1 %v4052_v55  ;;  %v4078_v63 = vld [vmem:[#allocation3 + $0x278] ss:$24 sps:$4 sm:$0xff]   ;;  %v4081_v3 = vld [vmem:[#allocation3 + $0x2ac] ss:$24 sps:$4 sm:$0xff]   ;;  %v4093_v11 = vld [vmem:[#allocation3 + $0x2a8] ss:$24 sps:$4 sm:$0xff]  }
  0x4d   : > { %1157 = vmatpush1.bf16.msra.mxu0 %v3957_v23  ;;  %1239 = vmatpush1.bf16.msra.mxu1 %v3963_v25  ;;  %5283 = vst [vmem:[#allocation16_spill] sm:$0xff] %v4078_v63  ;;  %5284 = vst [vmem:[#allocation17_spill] sm:$0xff] %v4081_v3  ;;  %v4087_v7 = vld [vmem:[#allocation3 + $0x2a0] ss:$24 sps:$4 sm:$0xff]   ;;  %v4090_v8 = vld [vmem:[#allocation3 + $0x2d4] ss:$24 sps:$4 sm:$0xff]  }
  0x4e   : > { %1158 = vmatprep.subr.bf16.mxu0 %v3960_v24  ;;  %1240 = vmatprep.subr.bf16.mxu1 %v3966_v26  ;;  %5286 = vst [vmem:[#allocation19_spill] sm:$0xff] %v4093_v11  ;;  %v4096_v13 = vld [vmem:[#allocation3 + $0x2dc] ss:$24 sps:$4 sm:$0xff]   ;;  %5288 = vst [vmem:[#allocation21_spill] sm:$0xff] %v4100_v14  ;;  %v4103_v17 = vld [vmem:[#allocation3 + $0x2d0] ss:$24 sps:$4 sm:$0xff]  }
  0x4f   : > { %5287 = vst [vmem:[#allocation20_spill] sm:$0xff] %v4096_v13  ;;  %v4106_v18 = vld [vmem:[#allocation3 + $0x304] ss:$24 sps:$4 sm:$0xff]   ;;  %v4109_v36 = vld [vmem:[#allocation3 + $0x2d8] ss:$24 sps:$4 sm:$0xff]   ;;  %v5291_v14 = vmov 0  }
  0x50   : > { %5289 = vst [vmem:[#allocation22_spill] sm:$0xff] %v4109_v36  ;;  %v4116_v0 = vld [vmem:[#allocation3 + $0x30c] ss:$24 sps:$4 sm:$0xff]   ;;  %v3529_v52 = vld [vmem:[#allocation3 + $0x300] ss:$24 sps:$4 sm:$0xff]   ;;  %s255_s11 = sand.u32 1, %s3786_s22  }
  0x51   : > { %1159 = vmatpush1.bf16.msra.mxu0 %v3969_v27  ;;  %1241 = vmatpush1.bf16.msra.mxu1 %v3975_v29  ;;  %5290 = vst [vmem:[#allocation23_spill] sm:$0xff] %v4116_v0  ;;  %v3537_v4 = vld [vmem:[#allocation3 + $0x334] ss:$24 sps:$4 sm:$0xff]   ;;  %vm2994_vm1 = vcmask 7168   ;;  %s3310_s13 = sshll.u32 %s3857_s25, 4  ;;  %s256_s17 = scalar_lea.vmem [#allocation6], %s255_s11 }
  0x52   : > { %1160 = vmatprep.subr.bf16.mxu0 %v3972_v28  ;;  %1242 = vmatprep.subr.bf16.mxu1 %v3978_v30  ;;  %s3013_s18 = sshll.u32 %s256_s17, 4  ;;  %vm2998_vm2 = vcmask 8192   ;;  %s5138_s26 = scalar_lea.hbm %s5186_s6, %s3310_s13  ;;  %s5140_s18 = int_to_ptr.vmem [resolvable:$true] %s3013_s18 }
  0x53   : > { %s3001_s25 = scalar_lea.sflag [#allocation5], %s255_s11  ;;  %s3728_s28 = scalar_lea.vmem %s5140_s18, 16 }
  0x54   : > { %p3729_p6 = scmp.ne.s32.totalorder %s5140_s18, %s3728_s28  ;;  %p5424_p9 = scmp.ne.s32.totalorder %s5269_s7, 0 }
  0x55   : > { %1161 = vmatpush1.bf16.msra.mxu0 %v3981_v31  ;;  %1243 = vmatpush1.bf16.msra.mxu1 %v3988_v33  ;;  %s3800_s29 = smov [#allocation6]  }
  0x56   : > { %1162 = vmatprep.subr.bf16.mxu0 %v3985_v32  ;;  %1244 = vmatprep.subr.bf16.mxu1 %v3991_v34  ;;  %p3730_p10 = pnand %p3729_p6, %p5424_p9  ;;  %s3732_s10 = sshll.u32 %s3800_s29, 4  ;;  %s3733_s10 = int_to_ptr.vmem [resolvable:$false] %s3732_s10 }
  0x57   : > { %s3734_s9 = scalar_lea.vmem %s3733_s10, 32  ;;  %p3735_p2 = scmp.lt.s32.totalorder %s5140_s18, %s3733_s10 }
  0x58   : > { %p3731_p12 = pneg %p3730_p10  ;;  %p3736_p3 = scmp.lt.s32.totalorder %s3734_s9, %s3728_s28 }
  0x59   : > { %1163 = vmatpush1.bf16.msra.mxu0 %v3994_v35  ;;  %1245 = vmatpush1.bf16.msra.mxu1 %v4001_v38 }
  0x5a   : > { %1164 = vmatprep.subr.bf16.mxu0 %v3998_v37  ;;  %1246 = vmatprep.subr.bf16.mxu1 %v4004_v39  ;;  %p3737_p4 = por %p3736_p3, %p3735_p2 }
  0x5c   : > { %p3738_p7 = pnand %p3737_p4, %p3731_p12 }
  0x5d   : > { %1165 = vmatpush1.bf16.msra.mxu0 %v4007_v40  ;;  %1247 = vmatpush1.bf16.msra.mxu1 %v4015_v43 }
  0x5e   : > { %1166 = vmatprep.subr.bf16.mxu0 %v4012_v42  ;;  %1248 = vmatprep.subr.bf16.mxu1 %v4018_v44 }
  0x61   : > { %1167 = vmatpush1.bf16.msra.mxu0 %v4021_v45  ;;  %1249 = vmatpush1.bf16.msra.mxu1 %v4031_v48  ;;  %v3558_v48 = vld [vmem:[#allocation3 + $0x3cc] ss:$24 sps:$4 sm:$0xff]  }
  0x62   : > { %1168 = vmatprep.subr.bf16.mxu0 %v4028_v47  ;;  %1250 = vmatprep.subr.bf16.mxu1 %v4034_v49  ;;  %v3555_v49 = vld [vmem:[#allocation3 + $0x3c4] ss:$24 sps:$4 sm:$0xff]  }
  0x65   : > { %1169 = vmatpush1.bf16.msra.mxu0 %v4039_v51  ;;  %1251 = vmatpush1.bf16.msra.mxu1 %v4048_v54  ;;  %v3547_v54 = vld [vmem:[#allocation3 + $0x390] ss:$24 sps:$4 sm:$0xff]  }
  0x66   : > { %1170 = vmatprep.subr.bf16.mxu0 %v4045_v53  ;;  %1252 = vmatprep.subr.bf16.mxu1 %v4055_v56  ;;  %v3549_v56 = vld [vmem:[#allocation3 + $0x394] ss:$24 sps:$4 sm:$0xff]  }
  0x69   : > { %1171 = vmatpush1.bf16.msra.mxu0 %v4058_v57  ;;  %1253 = vmatpush1.bf16.msra.mxu1 %v4066_v59  ;;  %v3541_v59 = vld [vmem:[#allocation3 + $0x360] ss:$24 sps:$4 sm:$0xff]  }
  0x6a   : > { %1172 = vmatprep.subr.bf16.mxu0 %v4062_v58  ;;  %1254 = vmatprep.subr.bf16.mxu1 %v4069_v60  ;;  %v3538_v60 = vld [vmem:[#allocation3 + $0x338] ss:$24 sps:$4 sm:$0xff]  }
  0x6d   : > { %1173 = vmatpush1.bf16.msra.mxu0 %v4072_v61  ;;  %1255 = vmatpush1.bf16.msra.mxu1 %v4078_v63  ;;  %v3543_v63 = vld [vmem:[#allocation3 + $0x364] ss:$24 sps:$4 sm:$0xff]  }
  0x6e   : > { %1174 = vmatprep.subr.bf16.mxu0 %v4075_v62  ;;  %1256 = vmatprep.subr.bf16.mxu1 %v4081_v3  ;;  %v3532_v3 = vld [vmem:[#allocation3 + $0x308] ss:$24 sps:$4 sm:$0xff]  }
  0x71   : > { %1175 = vmatpush1.bf16.msra.mxu0 %v4087_v7  ;;  %1257 = vmatpush1.bf16.msra.mxu1 %v4093_v11  ;;  %v3535_v11 = vld [vmem:[#allocation3 + $0x330] ss:$24 sps:$4 sm:$0xff]  }
  0x72   : > { %1176 = vmatprep.subr.bf16.mxu0 %v4090_v8  ;;  %1258 = vmatprep.subr.bf16.mxu1 %v4096_v13  ;;  %v3540_v13 = vld [vmem:[#allocation3 + $0x33c] ss:$24 sps:$4 sm:$0xff]  }
  0x75   : > { %1177 = vmatpush1.bf16.msra.mxu0 %v4103_v17  ;;  %1259 = vmatpush1.bf16.msra.mxu1 %v4109_v36  ;;  %v3546_v36 = vld [vmem:[#allocation3 + $0x36c] ss:$24 sps:$4 sm:$0xff]  }
  0x76   : > { %1187 = vmatprep.subr.bf16.mxu0 %v4106_v18  ;;  %1269 = vmatprep.subr.bf16.mxu1 %v4116_v0  ;;  %v3544_v0 = vld [vmem:[#allocation3 + $0x368] ss:$24 sps:$4 sm:$0xff]  }
  0x78   : > { %1179 = vmatmul.mubr.bf16.vlgmr.msra.gmra.mrb[0].mxu0 %v4114_v46  ;;  %1261 = vmatmul.mubr.bf16.vlgmr.msra.gmra.mrb[0].mxu1 %v4114_v46 }
  0x79   : > { %1188 = vmatpush1.bf16.msra.mxu0 %v3529_v52  ;;  %1219 = vmatprep.mubr.bf16.mxu0 %v5291_v14  ;;  %v3552_v52 = vld [vmem:[#allocation3 + $0x39c] ss:$24 sps:$4 sm:$0xff]  }
  0x7a   : > { %1189 = vmatprep.subr.bf16.mxu0 %v3537_v4  ;;  %1270 = vmatpush1.bf16.msra.mxu1 %v3532_v3  ;;  %v3550_v4 = vld [vmem:[#allocation3 + $0x398] ss:$24 sps:$4 sm:$0xff]  }
  0x7b   : > { %1301 = vmatprep.mubr.bf16.mxu1 %v5291_v14  ;;  %1271 = vmatprep.subr.bf16.mxu1 %v3540_v13  ;;  %v3553_v3 = vld [vmem:[#allocation3 + $0x3c0] ss:$24 sps:$4 sm:$0xff]   ;;  %v4142_v13 = vld [vmem:[#allocation3 + $0x3f0] ss:$24 sps:$4 sm:$0xff]  }
  0x7d   : > { %1190 = vmatpush1.bf16.msra.mxu0 %v3535_v11  ;;  %v3230_v11 = vld [vmem:[%s5182_s2 + $0x40] sm:$0xff] }
  0x7e   : > { %1191 = vmatprep.subr.bf16.mxu0 %v3543_v63  ;;  %1272 = vmatpush1.bf16.msra.mxu1 %v3538_v60  ;;  %v1392_v60 = vld [vmem:[%s5182_s2] sm:$0xff]  ;;  %v3561_v63 = vld [vmem:[#allocation3 + $0x3f4] ss:$24 sps:$4 sm:$0xff]  }
  0x7f   : > { %1273 = vmatprep.subr.bf16.mxu1 %v3546_v36  ;;  %1475 = vperm.xlu1 %3432, %v3230_v11   ;;  %v4147_v36 = vld [vmem:[#allocation3 + $0x3f8] ss:$24 sps:$4 sm:$0xff]  }
  0x80   : > { %1402 = vperm.xlu0 %3431, %v1392_v60   ;;  %5293 = vst [vmem:[#allocation25_spill] sm:$0xff] %v4147_v36  ;;  %v4160_v11 = vld [vmem:[#allocation3 + $0x420] ss:$24 sps:$4 sm:$0xff]   ;;  %v4163_v60 = vld [vmem:[#allocation3 + $0x454] ss:$24 sps:$4 sm:$0xff]  }
  0x81   : > { %1192 = vmatpush1.bf16.msra.mxu0 %v3541_v59  ;;  %v1393_v59 = vld [vmem:[%s5182_s2 + $0x8] sm:$0xff]  ;;  %5295 = vst [vmem:[#allocation27_spill] sm:$0xff] %v4160_v11  ;;  %5296 = vst [vmem:[#allocation28_spill] sm:$0xff] %v4163_v60 }
  0x82   : > { %1193 = vmatprep.subr.bf16.mxu0 %v3549_v56  ;;  %1274 = vmatpush1.bf16.msra.mxu1 %v3544_v0  ;;  %v4132_v56 = vld [vmem:[#allocation3 + $0x3c8] ss:$24 sps:$4 sm:$0xff]  }
  0x83   : > { %1275 = vmatprep.subr.bf16.mxu1 %v3552_v52  ;;  %v3231_v0 = vld [vmem:[%s5182_s2 + $0x48] sm:$0xff] }
  0x84   : > { %1480 = vperm.xlu1 %3432, %v3231_v0   ;;  %1407 = vperm.xlu0 %3431, %v1393_v59   ;;  %v4153_v52 = vld [vmem:[#allocation3 + $0x42c] ss:$24 sps:$4 sm:$0xff]   ;;  %v4172_v0 = vld [vmem:[#allocation3 + $0x45c] ss:$24 sps:$4 sm:$0xff]  }
  0x85   : > { %1194 = vmatpush1.bf16.msra.mxu0 %v3547_v54  ;;  %v4137_v54 = vld [vmem:[#allocation3 + $0x3fc] ss:$24 sps:$4 sm:$0xff]   ;;  %5294 = vst [vmem:[#allocation26_spill] sm:$0xff] %v4153_v52  ;;  %5298 = vst [vmem:[#allocation30_spill] sm:$0xff] %v4172_v0 }
  0x86   : > { %1195 = vmatprep.subr.bf16.mxu0 %v3555_v49  ;;  %1276 = vmatpush1.bf16.msra.mxu1 %v3550_v4  ;;  %v4144_v49 = vld [vmem:[#allocation3 + $0x424] ss:$24 sps:$4 sm:$0xff]   ;;  %v274_v4 = vsub.s32 2, %v4009_v41 }
  0x87   : > { %1277 = vmatprep.subr.bf16.mxu1 %v3558_v48  ;;  %5292 = vst [vmem:[#allocation24_spill] sm:$0xff] %v4144_v49  ;;  %v3239_v48 = vld [vmem:[%s5182_s2 + $0x88] sm:$0xff]  ;;  %v1395_v41 = vld [vmem:[%s5182_s2 + $0x18] sm:$0xff] }
  0x88   : > { %1589 = vperm.xlu1 %3432, %v3239_v48   ;;  %v4175_v59 = vrot.slane %v4036_v50, %v274_v4  ;;  %v1394_v48 = vld [vmem:[%s5182_s2 + $0x10] sm:$0xff]  ;;  %v3233_v50 = vld [vmem:[%s5182_s2 + $0x58] sm:$0xff] }
  0x89   : > { %1196 = vmatpush1.bf16.msra.mxu0 %v3553_v3  ;;  %v3238_v3 = vld [vmem:[%s5182_s2 + $0x80] sm:$0xff] }
  0x8a   : > { %1197 = vmatprep.subr.bf16.mxu0 %v3561_v63  ;;  %1278 = vmatpush1.bf16.msra.mxu1 %v4132_v56  ;;  %v4166_v63 = vld [vmem:[#allocation3 + $0x428] ss:$24 sps:$4 sm:$0xff]   ;;  %v4195_v4 = vpack.c.bf16 %v4175_v59, %v4175_v59 }
  0x8b   : > { %1279 = vmatprep.subr.bf16.mxu1 %v4137_v54  ;;  %5297 = vst [vmem:[#allocation29_spill] sm:$0xff] %v4166_v63  ;;  %1584 = vperm.xlu0 %3431, %v3238_v3   ;;  %v4184_v3 = vld [vmem:[#allocation3 + $0x14] ss:$24 sps:$4 sm:$0xff]  }
  0x8c   : > { %5300 = vst [vmem:[#allocation32_spill] sm:$0xff] %v4184_v3  ;;  %1417 = vperm.xlu1 %3432, %v1395_v41   ;;  %v4201_v41 = vld [vmem:[#allocation3 + $0x10] ss:$24 sps:$4 sm:$0xff]  }
  0x8d   : > { %1198 = vmatpush1.bf16.msra.mxu0 %v4142_v13  ;;  %5302 = vst [vmem:[#allocation34_spill] sm:$0xff] %v4201_v41 }
  0x8e   : > { %1199 = vmatprep.subr.bf16.mxu0 %v4144_v49  ;;  %1280 = vmatpush1.bf16.msra.mxu1 %v4147_v36  ;;  %v4181_v49 = vld [vmem:[#allocation3 + $0x450] ss:$24 sps:$4 sm:$0xff]  }
  0x8f   : > { %1281 = vmatprep.subr.bf16.mxu1 %v4153_v52  ;;  %5299 = vst [vmem:[#allocation31_spill] sm:$0xff] %v4181_v49  ;;  %v4187_v52 = vld [vmem:[#allocation3 + $0x458] ss:$24 sps:$4 sm:$0xff]   ;;  %1412 = vperm.xlu0 %3431, %v1394_v48   ;;  %v4204_v48 = vld [vmem:[#allocation3 + $0x44] ss:$24 sps:$4 sm:$0xff]  }
  0x90   : > { %5301 = vst [vmem:[#allocation33_spill] sm:$0xff] %v4187_v52  ;;  %5303 = vst [vmem:[#allocation35_spill] sm:$0xff] %v4204_v48  ;;  %1490 = vperm.xlu1 %3432, %v3233_v50   ;;  %v4223_v50 = vld [vmem:[#allocation3 + $0x70] ss:$24 sps:$4 sm:$0xff]  }
  0x91   : > { %1200 = vmatpush1.bf16.msra.mxu0 %v4160_v11  ;;  %5306 = vst [vmem:[#allocation38_spill] sm:$0xff] %v4223_v50 }
  0x92   : > { %1201 = vmatprep.subr.bf16.mxu0 %v4163_v60  ;;  %1282 = vmatpush1.bf16.msra.mxu1 %v4166_v63  ;;  %v3232_v60 = vld [vmem:[%s5182_s2 + $0x50] sm:$0xff] }
  0x93   : > { %1283 = vmatprep.subr.bf16.mxu1 %v4172_v0  ;;  %1485 = vperm.xlu0 %3431, %v3232_v60   ;;  %v3241_v0 = vld [vmem:[%s5182_s2 + $0x98] sm:$0xff]  ;;  %v4221_v60 = vld [vmem:[#allocation3 + $0x74] ss:$24 sps:$4 sm:$0xff]  }
  0x94   : > { %5305 = vst [vmem:[#allocation37_spill] sm:$0xff] %v4221_v60  ;;  %1599 = vperm.xlu1 %3432, %v3241_v0   ;;  %v3234_v0 = vld [vmem:[%s5182_s2 + $0x60] sm:$0xff] }
  0x95   : > { %1202 = vmatpush1.bf16.msra.mxu0 %v4181_v49  ;;  %v3240_v49 = vld [vmem:[%s5182_s2 + $0x90] sm:$0xff] }
  0x96   : > { %1310 = vmatprep.subr.bf16.mxu0 %v4184_v3  ;;  %1284 = vmatpush1.bf16.msra.mxu1 %v4187_v52  ;;  %v4216_v3 = vld [vmem:[#allocation3 + $0x40] ss:$24 sps:$4 sm:$0xff]  }
  0x97   : > { %1718 = vmatprep.subr.bf16.mxu1 %v3921_v1  ;;  %5304 = vst [vmem:[#allocation36_spill] sm:$0xff] %v4216_v3  ;;  %1594 = vperm.xlu0 %3431, %v3240_v49   ;;  %v1397_v1 = vld [vmem:[%s5182_s2 + $0x28] sm:$0xff] }
  0x98   : > { %1220 = vmatmul.mubr.bf16.vlgmr.msra.gmra.mrb[0].mxu0 %v4195_v4  ;;  %v3235_v49 = vld [vmem:[%s5182_s2 + $0x68] sm:$0xff]  ;;  %1427 = vperm.xlu1 %3432, %v1397_v1   ;;  %v1399_v1 = vld [vmem:[%s5182_s2 + $0x38] sm:$0xff] }
  0x99   : > { %1311 = vmatpush1.bf16.msra.mxu0 %v4201_v41  ;;  %1342 = vmatprep.mubr.bf16.mxu0 %v4052_v55  ;;  %v1396_v41 = vld [vmem:[%s5182_s2 + $0x20] sm:$0xff] }
  0x9a   : > { %1302 = vmatmul.mubr.bf16.vlgmr.msra.gmra.mrb[0].mxu1 %v4195_v4  ;;  %1312 = vmatprep.subr.bf16.mxu0 %v4204_v48  ;;  %v4233_v55 = vld [vmem:[#allocation3 + $0xa4] ss:$24 sps:$4 sm:$0xff]   ;;  %v4243_v48 = vld [vmem:[#allocation3 + $0xa0] ss:$24 sps:$4 sm:$0xff]  }
  0x9b   : > { %1719 = vmatpush1.bf16.msra.mxu1 %v3923_v2  ;;  %5307 = vst [vmem:[#allocation39_spill] sm:$0xff] %v4233_v55  ;;  %5308 = vst [vmem:[#allocation40_spill] sm:$0xff] %v4243_v48  ;;  %1422 = vperm.xlu0 %3431, %v1396_v41   ;;  %v4245_v2 = vld [vmem:[#allocation3 + $0xd4] ss:$24 sps:$4 sm:$0xff]   ;;  %v3242_v41 = vld [vmem:[%s5182_s2 + $0xa0] sm:$0xff] }
  0x9c   : > { %1720 = vmatprep.subr.bf16.mxu1 %v3927_v5  ;;  %5309 = vst [vmem:[#allocation41_spill] sm:$0xff] %v4245_v2  ;;  %1500 = vperm.xlu1 %3432, %v3235_v49   ;;  %v3243_v5 = vld [vmem:[%s5182_s2 + $0xa8] sm:$0xff]  ;;  %v4273_v49 = vld [vmem:[#allocation3 + $0x100] ss:$24 sps:$4 sm:$0xff]  }
  0x9d   : > { %1313 = vmatpush1.bf16.msra.mxu0 %v4216_v3  ;;  %5312 = vst [vmem:[#allocation44_spill] sm:$0xff] %v4273_v49 }
  0x9e   : > { %1314 = vmatprep.subr.bf16.mxu0 %v4221_v60 }
  0x9f   : > { %1721 = vmatpush1.bf16.msra.mxu1 %v3929_v6  ;;  %1495 = vperm.xlu0 %3431, %v3234_v0   ;;  %v4259_v6 = vld [vmem:[#allocation3 + $0xd0] ss:$24 sps:$4 sm:$0xff]   ;;  %v3237_v0 = vld [vmem:[%s5182_s2 + $0x78] sm:$0xff] }
  0xa0   : > { %1722 = vmatprep.subr.bf16.mxu1 %v3932_v9  ;;  %5310 = vst [vmem:[#allocation42_spill] sm:$0xff] %v4259_v6  ;;  %v4263_v9 = vld [vmem:[#allocation3 + $0x104] ss:$24 sps:$4 sm:$0xff]   ;;  %1609 = vperm.xlu1 %3432, %v3243_v5   ;;  %v4287_v5 = vld [vmem:[#allocation3 + $0x130] ss:$24 sps:$4 sm:$0xff]  }
  0xa1   : > { %1315 = vmatpush1.bf16.msra.mxu0 %v4223_v50  ;;  %5311 = vst [vmem:[#allocation43_spill] sm:$0xff] %v4263_v9  ;;  %5314 = vst [vmem:[#allocation46_spill] sm:$0xff] %v4287_v5 }
  0xa2   : > { %1316 = vmatprep.subr.bf16.mxu0 %v4233_v55 }
  0xa3   : > { %1723 = vmatpush1.bf16.msra.mxu1 %v3935_v10  ;;  %1604 = vperm.xlu0 %3431, %v3242_v41   ;;  %v1398_v10 = vld [vmem:[%s5182_s2 + $0x30] sm:$0xff]  ;;  %v3245_v41 = vld [vmem:[%s5182_s2 + $0xb8] sm:$0xff] }
  0xa4   : > { %1724 = vmatprep.subr.bf16.mxu1 %v3938_v12  ;;  %v4277_v12 = vld [vmem:[#allocation3 + $0x134] ss:$24 sps:$4 sm:$0xff]   ;;  %1437 = vperm.xlu1 %3432, %v1399_v1   ;;  %v4301_v1 = vld [vmem:[#allocation3 + $0x160] ss:$24 sps:$4 sm:$0xff]  }
  0xa5   : > { %1317 = vmatpush1.bf16.msra.mxu0 %v4243_v48  ;;  %5313 = vst [vmem:[#allocation45_spill] sm:$0xff] %v4277_v12  ;;  %5316 = vst [vmem:[#allocation48_spill] sm:$0xff] %v4301_v1 }
  0xa6   : > { %1318 = vmatprep.subr.bf16.mxu0 %v4245_v2 }
  0xa7   : > { %1725 = vmatpush1.bf16.msra.mxu1 %v3941_v15  ;;  %1432 = vperm.xlu0 %3431, %v1398_v10   ;;  %v3236_v15 = vld [vmem:[%s5182_s2 + $0x70] sm:$0xff] }
  0xa8   : > { %1726 = vmatprep.subr.bf16.mxu1 %v3944_v16  ;;  %v4291_v16 = vld [vmem:[#allocation3 + $0x164] ss:$24 sps:$4 sm:$0xff]   ;;  %1510 = vperm.xlu1 %3432, %v3237_v0   ;;  %v4309_v10 = vld [vmem:[#allocation3 + $0x190] ss:$24 sps:$4 sm:$0xff]   ;;  %v4399_v0 = vld [vmem:[#allocation3 + $0x3d4] ss:$24 sps:$4 sm:$0xff]  }
  0xa9   : > { %1319 = vmatpush1.bf16.msra.mxu0 %v4259_v6  ;;  %5315 = vst [vmem:[#allocation47_spill] sm:$0xff] %v4291_v16  ;;  %5318 = vst [vmem:[#allocation50_spill] sm:$0xff] %v4309_v10 }
  0xaa   : > { %1320 = vmatprep.subr.bf16.mxu0 %v4263_v9  ;;  %5341 = vst [vmem:[#allocation73_spill] sm:$0xff] %v4399_v0 }
  0xab   : > { %1727 = vmatpush1.bf16.msra.mxu1 %v3947_v19  ;;  %1505 = vperm.xlu0 %3431, %v3236_v15   ;;  %v3244_v19 = vld [vmem:[%s5182_s2 + $0xb0] sm:$0xff] }
  0xac   : > { %1728 = vmatprep.subr.bf16.mxu1 %v3950_v20  ;;  %v4305_v20 = vld [vmem:[#allocation3 + $0x194] ss:$24 sps:$4 sm:$0xff]   ;;  %1619 = vperm.xlu1 %3432, %v3245_v41   ;;  %v4402_v15 = vld [vmem:[#allocation3 + $0x3d0] ss:$24 sps:$4 sm:$0xff]   ;;  %v4408_v41 = vld [vmem:[#allocation3 + $0x400] ss:$24 sps:$4 sm:$0xff]  }
  0xad   : > { %1321 = vmatpush1.bf16.msra.mxu0 %v4273_v49  ;;  %5317 = vst [vmem:[#allocation49_spill] sm:$0xff] %v4305_v20  ;;  %5342 = vst [vmem:[#allocation74_spill] sm:$0xff] %v4402_v15 }
  0xae   : > { %1322 = vmatprep.subr.bf16.mxu0 %v4277_v12  ;;  %5344 = vst [vmem:[#allocation76_spill] sm:$0xff] %v4408_v41 }
  0xaf   : > { %1729 = vmatpush1.bf16.msra.mxu1 %v3957_v23  ;;  %1614 = vperm.xlu0 %3431, %v3244_v19   ;;  %v4313_v23 = vld [vmem:[#allocation3 + $0x1c4] ss:$24 sps:$4 sm:$0xff]   ;;  %v4411_v19 = vld [vmem:[#allocation3 + $0x434] ss:$24 sps:$4 sm:$0xff]  }
  0xb0   : > { %1730 = vmatprep.subr.bf16.mxu1 %v3960_v24  ;;  %5319 = vst [vmem:[#allocation51_spill] sm:$0xff] %v4313_v23  ;;  %v4317_v24 = vld [vmem:[#allocation3 + $0x1c0] ss:$24 sps:$4 sm:$0xff]   ;;  %5345 = vst [vmem:[#allocation77_spill] sm:$0xff] %v4411_v19 }
  0xb1   : > { %1323 = vmatpush1.bf16.msra.mxu0 %v4287_v5  ;;  %5320 = vst [vmem:[#allocation52_spill] sm:$0xff] %v4317_v24 }
  0xb2   : > { %1324 = vmatprep.subr.bf16.mxu0 %v4291_v16 }
  0xb3   : > { %1731 = vmatpush1.bf16.msra.mxu1 %v3969_v27  ;;  %v4321_v27 = vld [vmem:[#allocation3 + $0x1f4] ss:$24 sps:$4 sm:$0xff]  }
  0xb4   : > { %1732 = vmatprep.subr.bf16.mxu1 %v3972_v28  ;;  %5321 = vst [vmem:[#allocation53_spill] sm:$0xff] %v4321_v27  ;;  %v4325_v28 = vld [vmem:[#allocation3 + $0x1f0] ss:$24 sps:$4 sm:$0xff]  }
  0xb5   : > { %1325 = vmatpush1.bf16.msra.mxu0 %v4301_v1  ;;  %5322 = vst [vmem:[#allocation54_spill] sm:$0xff] %v4325_v28 }
  0xb6   : > { %1326 = vmatprep.subr.bf16.mxu0 %v4305_v20 }
  0xb7   : > { %1733 = vmatpush1.bf16.msra.mxu1 %v3981_v31  ;;  %v4329_v31 = vld [vmem:[#allocation3 + $0x224] ss:$24 sps:$4 sm:$0xff]  }
  0xb8   : > { %1734 = vmatprep.subr.bf16.mxu1 %v3985_v32  ;;  %5323 = vst [vmem:[#allocation55_spill] sm:$0xff] %v4329_v31  ;;  %v4333_v32 = vld [vmem:[#allocation3 + $0x220] ss:$24 sps:$4 sm:$0xff]  }
  0xb9   : > { %1327 = vmatpush1.bf16.msra.mxu0 %v4309_v10  ;;  %5324 = vst [vmem:[#allocation56_spill] sm:$0xff] %v4333_v32 }
  0xba   : > { %1328 = vmatprep.subr.bf16.mxu0 %v4313_v23 }
  0xbb   : > { %1735 = vmatpush1.bf16.msra.mxu1 %v3994_v35  ;;  %v4337_v35 = vld [vmem:[#allocation3 + $0x254] ss:$24 sps:$4 sm:$0xff]  }
  0xbc   : > { %1736 = vmatprep.subr.bf16.mxu1 %v3998_v37  ;;  %5325 = vst [vmem:[#allocation57_spill] sm:$0xff] %v4337_v35  ;;  %v4341_v37 = vld [vmem:[#allocation3 + $0x250] ss:$24 sps:$4 sm:$0xff]  }
  0xbd   : > { %1329 = vmatpush1.bf16.msra.mxu0 %v4317_v24  ;;  %5326 = vst [vmem:[#allocation58_spill] sm:$0xff] %v4341_v37 }
  0xbe   : > { %1330 = vmatprep.subr.bf16.mxu0 %v4321_v27 }
  0xbf   : > { %1737 = vmatpush1.bf16.msra.mxu1 %v4007_v40  ;;  %v4345_v40 = vld [vmem:[#allocation3 + $0x284] ss:$24 sps:$4 sm:$0xff]  }
  0xc0   : > { %1738 = vmatprep.subr.bf16.mxu1 %v4012_v42  ;;  %5327 = vst [vmem:[#allocation59_spill] sm:$0xff] %v4345_v40  ;;  %v4349_v42 = vld [vmem:[#allocation3 + $0x280] ss:$24 sps:$4 sm:$0xff]  }
  0xc1   : > { %1331 = vmatpush1.bf16.msra.mxu0 %v4325_v28  ;;  %5328 = vst [vmem:[#allocation60_spill] sm:$0xff] %v4349_v42 }
  0xc2   : > { %1332 = vmatprep.subr.bf16.mxu0 %v4329_v31 }
  0xc3   : > { %1739 = vmatpush1.bf16.msra.mxu1 %v4021_v45  ;;  %v4353_v45 = vld [vmem:[#allocation3 + $0x2b4] ss:$24 sps:$4 sm:$0xff]  }
  0xc4   : > { %1740 = vmatprep.subr.bf16.mxu1 %v4028_v47  ;;  %5329 = vst [vmem:[#allocation61_spill] sm:$0xff] %v4353_v45  ;;  %v4357_v47 = vld [vmem:[#allocation3 + $0x2b0] ss:$24 sps:$4 sm:$0xff]  }
  0xc5   : > { %1333 = vmatpush1.bf16.msra.mxu0 %v4333_v32  ;;  %5330 = vst [vmem:[#allocation62_spill] sm:$0xff] %v4357_v47 }
  0xc6   : > { %1334 = vmatprep.subr.bf16.mxu0 %v4337_v35 }
  0xc7   : > { %1741 = vmatpush1.bf16.msra.mxu1 %v4039_v51  ;;  %v4361_v51 = vld [vmem:[#allocation3 + $0x2e4] ss:$24 sps:$4 sm:$0xff]  }
  0xc8   : > { %1742 = vmatprep.subr.bf16.mxu1 %v4045_v53  ;;  %5331 = vst [vmem:[#allocation63_spill] sm:$0xff] %v4361_v51  ;;  %v4365_v53 = vld [vmem:[#allocation3 + $0x2e0] ss:$24 sps:$4 sm:$0xff]  }
  0xc9   : > { %1335 = vmatpush1.bf16.msra.mxu0 %v4341_v37  ;;  %5332 = vst [vmem:[#allocation64_spill] sm:$0xff] %v4365_v53 }
  0xca   : > { %1336 = vmatprep.subr.bf16.mxu0 %v4345_v40 }
  0xcb   : > { %1743 = vmatpush1.bf16.msra.mxu1 %v4058_v57  ;;  %v4369_v57 = vld [vmem:[#allocation3 + $0x314] ss:$24 sps:$4 sm:$0xff]  }
  0xcc   : > { %1744 = vmatprep.subr.bf16.mxu1 %v4062_v58  ;;  %5333 = vst [vmem:[#allocation65_spill] sm:$0xff] %v4369_v57  ;;  %v4373_v58 = vld [vmem:[#allocation3 + $0x310] ss:$24 sps:$4 sm:$0xff]  }
  0xcd   : > { %1337 = vmatpush1.bf16.msra.mxu0 %v4349_v42  ;;  %5334 = vst [vmem:[#allocation66_spill] sm:$0xff] %v4373_v58 }
  0xce   : > { %1338 = vmatprep.subr.bf16.mxu0 %v4353_v45 }
  0xcf   : > { %1745 = vmatpush1.bf16.msra.mxu1 %v4072_v61  ;;  %v4377_v61 = vld [vmem:[#allocation3 + $0x344] ss:$24 sps:$4 sm:$0xff]  }
  0xd0   : > { %1746 = vmatprep.subr.bf16.mxu1 %v4075_v62  ;;  %5335 = vst [vmem:[#allocation67_spill] sm:$0xff] %v4377_v61  ;;  %v4382_v62 = vld [vmem:[#allocation3 + $0x340] ss:$24 sps:$4 sm:$0xff]  }
  0xd1   : > { %1339 = vmatpush1.bf16.msra.mxu0 %v4357_v47  ;;  %5336 = vst [vmem:[#allocation68_spill] sm:$0xff] %v4382_v62  ;;  %v5362_v47 = vld [vmem:[#allocation18_spill] sm:$0xff] }
  0xd2   : > { %1340 = vmatprep.subr.bf16.mxu0 %v4361_v51 }
  0xd3   : > { %1747 = vmatpush1.bf16.msra.mxu1 %v4087_v7  ;;  %v4386_v7 = vld [vmem:[#allocation3 + $0x374] ss:$24 sps:$4 sm:$0xff]  }
  0xd4   : > { %1748 = vmatprep.subr.bf16.mxu1 %v4090_v8  ;;  %5337 = vst [vmem:[#allocation69_spill] sm:$0xff] %v4386_v7  ;;  %v4390_v8 = vld [vmem:[#allocation3 + $0x370] ss:$24 sps:$4 sm:$0xff]  }
  0xd5   : > { %1341 = vmatpush1.bf16.msra.mxu0 %v4365_v53  ;;  %5338 = vst [vmem:[#allocation70_spill] sm:$0xff] %v4390_v8 }
  0xd6   : > { %1351 = vmatprep.subr.bf16.mxu0 %v4369_v57 }
  0xd7   : > { %1749 = vmatpush1.bf16.msra.mxu1 %v4103_v17  ;;  %v4396_v17 = vld [vmem:[#allocation3 + $0x3a0] ss:$24 sps:$4 sm:$0xff]  }
  0xd8   : > { %1343 = vmatmul.mubr.bf16.vlgmr.msra.gmra.mrb[4].mxu0 %v4114_v46  ;;  %1791 = vmatprep.subr.bf16.mxu1 %v4106_v18  ;;  %v4393_v46 = vld [vmem:[#allocation3 + $0x3a4] ss:$24 sps:$4 sm:$0xff]   ;;  %5340 = vst [vmem:[#allocation72_spill] sm:$0xff] %v4396_v17 }
  0xd9   : > { %1352 = vmatpush1.bf16.msra.mxu0 %v4373_v58  ;;  %1383 = vmatprep.mubr.bf16.mxu0 %v5291_v14  ;;  %5339 = vst [vmem:[#allocation71_spill] sm:$0xff] %v4393_v46  ;;  %v4405_v18 = vld [vmem:[#allocation3 + $0x404] ss:$24 sps:$4 sm:$0xff]  }
  0xda   : > { %1353 = vmatprep.subr.bf16.mxu0 %v4377_v61  ;;  %5343 = vst [vmem:[#allocation75_spill] sm:$0xff] %v4405_v18  ;;  %v5361_v58 = vld [vmem:[#allocation21_spill] sm:$0xff] }
  0xdd   : > { %1354 = vmatpush1.bf16.msra.mxu0 %v4382_v62  ;;  %v3680_v62 = vld [vmem:[#allocation3 + $0x98] ss:$24 sps:$4 sm:$0xff]  }
  0xde   : > { %1355 = vmatprep.subr.bf16.mxu0 %v4386_v7  ;;  %v3678_v7 = vld [vmem:[#allocation3 + $0x68] ss:$24 sps:$4 sm:$0xff]  }
  0xe1   : > { %1356 = vmatpush1.bf16.msra.mxu0 %v4390_v8  ;;  %v3676_v8 = vld [vmem:[#allocation3 + $0x38] ss:$24 sps:$4 sm:$0xff]  }
  0xe2   : > { %1357 = vmatprep.subr.bf16.mxu0 %v4393_v46  ;;  %v4414_v46 = vld [vmem:[#allocation3 + $0x430] ss:$24 sps:$4 sm:$0xff]  }
  0xe3   : > { %5346 = vst [vmem:[#allocation78_spill] sm:$0xff] %v4414_v46 }
  0xe5   : > { %1358 = vmatpush1.bf16.msra.mxu0 %v4396_v17  ;;  %v4417_v17 = vld [vmem:[#allocation3 + $0x464] ss:$24 sps:$4 sm:$0xff]  }
  0xe6   : > { %1359 = vmatprep.subr.bf16.mxu0 %v4399_v0  ;;  %5347 = vst [vmem:[#allocation79_spill] sm:$0xff] %v4417_v17  ;;  %v4420_v0 = vld [vmem:[#allocation3 + $0x460] ss:$24 sps:$4 sm:$0xff]  }
  0xe7   : > { %5348 = vst [vmem:[#allocation80_spill] sm:$0xff] %v4420_v0 }
  0xe9   : > { %1360 = vmatpush1.bf16.msra.mxu0 %v4402_v15  ;;  %v3673_v15 = vld [vmem:[#allocation3 + $0xc] ss:$24 sps:$4 sm:$0xff]  }
  0xea   : > { %1361 = vmatprep.subr.bf16.mxu0 %v4405_v18  ;;  %v3674_v18 = vld [vmem:[#allocation3 + $0x8] ss:$24 sps:$4 sm:$0xff]  }
  0xed   : > { %1362 = vmatpush1.bf16.msra.mxu0 %v4408_v41  ;;  %v3675_v41 = vld [vmem:[#allocation3 + $0x3c] ss:$24 sps:$4 sm:$0xff]  }
  0xee   : > { %1363 = vmatprep.subr.bf16.mxu0 %v4411_v19  ;;  %v3677_v19 = vld [vmem:[#allocation3 + $0x6c] ss:$24 sps:$4 sm:$0xff]  }
  0xf1   : > { %1364 = vmatpush1.bf16.msra.mxu0 %v4414_v46  ;;  %v3679_v46 = vld [vmem:[#allocation3 + $0x9c] ss:$24 sps:$4 sm:$0xff]  }
  0xf2   : > { %1365 = vmatprep.subr.bf16.mxu0 %v4417_v17  ;;  %v3681_v17 = vld [vmem:[#allocation3 + $0xcc] ss:$24 sps:$4 sm:$0xff]  }
  0xf5   : > { %1366 = vmatpush1.bf16.msra.mxu0 %v4420_v0 }
  0xf6   : > { %1864 = vmatprep.subr.bf16.mxu0 %v3673_v15 }
  0xf8   : > { %1384 = vmatmul.mubr.bf16.vlgmr.msra.gmra.mrb[4].mxu0 %v4195_v4  ;;  %v5357_v4 = vld [vmem:[#allocation19_spill] sm:$0xff] }
  0xf9   : > { %1865 = vmatpush1.bf16.msra.mxu0 %v3674_v18 }
  0xfa   : > { %1866 = vmatprep.subr.bf16.mxu0 %v3675_v41 }
  0xfd   : > { %1867 = vmatpush1.bf16.msra.mxu0 %v3676_v8  ;;  %v5359_v8 = vld [vmem:[#allocation22_spill] sm:$0xff] }
  0xfe   : > { %1868 = vmatprep.subr.bf16.mxu0 %v3677_v19 }
 0x101   : > { %1869 = vmatpush1.bf16.msra.mxu0 %v3678_v7 }
 0x102   : > { %1870 = vmatprep.subr.bf16.mxu0 %v3679_v46 }
 0x105   : > { %1871 = vmatpush1.bf16.msra.mxu0 %v3680_v62  ;;  %v5358_v62 = vld [vmem:[#allocation20_spill] sm:$0xff] }
 0x106   : > { %1872 = vmatprep.subr.bf16.mxu0 %v3681_v17  ;;  %v5360_v17 = vld [vmem:[#allocation23_spill] sm:$0xff] }
 0x109   : > { %1873 = vmatpush1.bf16.msra.mxu0 %v3952_v21  ;;  %v5349_v21 = vld [vmem:[#allocation9_spill] sm:$0xff] }
 0x10a   : > { %1874 = vmatprep.subr.bf16.mxu0 %v3954_v22  ;;  %v5350_v22 = vld [vmem:[#allocation10_spill] sm:$0xff] }
 0x10d   : > { %1875 = vmatpush1.bf16.msra.mxu0 %v3963_v25  ;;  %v5351_v25 = vld [vmem:[#allocation12_spill] sm:$0xff] }
 0x10e   : > { %1876 = vmatprep.subr.bf16.mxu0 %v3966_v26  ;;  %v5352_v26 = vld [vmem:[#allocation13_spill] sm:$0xff] }
 0x111   : > { %1877 = vmatpush1.bf16.msra.mxu0 %v3975_v29  ;;  %v4441_v29 = vpop.permute.xlu1 %1475 }
 0x112   : > { %1878 = vmatprep.subr.bf16.mxu0 %v3978_v30  ;;  %v5353_v30 = vld [vmem:[#allocation14_spill] sm:$0xff] }
 0x115   : > { %1879 = vmatpush1.bf16.msra.mxu0 %v3988_v33  ;;  %v4444_v33 = vpop.permute.xlu0 %1402 }
 0x116   : > { %1880 = vmatprep.subr.bf16.mxu0 %v3991_v34  ;;  %v5354_v34 = vld [vmem:[#allocation15_spill] sm:$0xff]  ;;  %v1440_v57 = vmul.f32 %v4444_v33, %v5361_v58 }
 0x119   : > { %1881 = vmatpush1.bf16.msra.mxu0 %v4001_v38  ;;  %v5355_v38 = vld [vmem:[#allocation16_spill] sm:$0xff] }
 0x11a   : > { %1882 = vmatprep.subr.bf16.mxu0 %v4004_v39  ;;  %v5356_v39 = vld [vmem:[#allocation17_spill] sm:$0xff] }
 0x11d   : > { %1883 = vmatpush1.bf16.msra.mxu0 %v4015_v43  ;;  %v4449_v43 = vpop.permute.xlu1 %1480 }
 0x11e   : > { %1884 = vmatprep.subr.bf16.mxu0 %v4018_v44  ;;  %v4451_v44 = vpop.permute.xlu0 %1407 }
 0x11f   : > { %v1443_v32 = vmul.f32 %v4451_v44, %v5361_v58 }
 0x121   : > { %1885 = vmatpush1.bf16.msra.mxu0 %v5349_v21  ;;  %v4455_v7 = vpop.permute.xlu1 %1589 }
 0x122   : > { %1886 = vmatprep.subr.bf16.mxu0 %v5350_v22  ;;  %v4458_v46 = vpop.permute.xlu0 %1584 }
 0x125   : > { %1887 = vmatpush1.bf16.msra.mxu0 %v5351_v25  ;;  %v4461_v15 = vpop.permute.xlu1 %1417 }
 0x126   : > { %1888 = vmatprep.subr.bf16.mxu0 %v5352_v26  ;;  %v4463_v18 = vpop.permute.xlu0 %1412  ;;  %v1449_v9 = vmul.f32 %v4461_v15, %v5361_v58 }
 0x127   : > { %v1446_v12 = vmul.f32 %v4463_v18, %v5361_v58 }
 0x129   : > { %1889 = vmatpush1.bf16.msra.mxu0 %v5353_v30  ;;  %v4465_v41 = vpop.permute.xlu1 %1490 }
 0x12a   : > { %1890 = vmatprep.subr.bf16.mxu0 %v5354_v34  ;;  %v4467_v19 = vpop.permute.xlu0 %1485 }
 0x12d   : > { %1891 = vmatpush1.bf16.msra.mxu0 %v5355_v38  ;;  %v4469_v21 = vpop.permute.xlu1 %1599 }
 0x12e   : > { %1892 = vmatprep.subr.bf16.mxu0 %v5356_v39  ;;  %v4471_v22 = vpop.permute.xlu0 %1594 }
 0x131   : > { %1893 = vmatpush1.bf16.msra.mxu0 %v5357_v4  ;;  %v4473_v25 = vpop.permute.xlu1 %1427 }
 0x132   : > { %1894 = vmatprep.subr.bf16.mxu0 %v5358_v62  ;;  %v4475_v26 = vpop.permute.xlu0 %1422 }
 0x135   : > { %1895 = vmatpush1.bf16.msra.mxu0 %v5359_v8  ;;  %v4477_v30 = vpop.permute.xlu1 %1500 }
 0x136   : > { %1937 = vmatprep.subr.bf16.mxu0 %v5360_v17  ;;  %v4479_v34 = vpop.permute.xlu0 %1495 }
 0x139   : > { %v4481_v38 = vpop.permute.xlu1 %1609 }
 0x13a   : > { %v4483_v39 = vpop.permute.xlu0 %1604 }
 0x13d   : > { %v4485_v4 = vpop.permute.xlu1 %1437 }
 0x13e   : > { %v4487_v62 = vpop.permute.xlu0 %1432  ;;  %v1461_v53 = vmul.f32 %v4485_v4, %v5361_v58 }
 0x13f   : > { %v1458_v51 = vmul.f32 %v4487_v62, %v5361_v58 }
 0x141   : > { %v4489_v8 = vpop.permute.xlu1 %1510 }
 0x142   : > { %v4491_v17 = vpop.permute.xlu0 %1505 }
 0x145   : > { %v4493_v61 = vpop.permute.xlu1 %1619 }
 0x146   : > { %v4502_v40 = vpop.permute.xlu0 %1614 }
 0x16b   : > { %v1221_v0 = vpop.f32.mrb[0].mxu0 }
 0x16c   : > { %v1516_v45 = vrot.slane %v1221_v0, %v5362_v47  ;;  %v1223_v42 = vpop.f32.mrb[1].mxu0 }
 0x16d   : > { %v4504_v37 = vpop.f32.mrb[0].mxu1  ;;  %v1225_v35 = vpop.f32.mrb[2].mxu0 }
 0x16e   : > { %v1305_v31 = vpop.f32.mrb[1].mxu1  ;;  %v1226_v28 = vpop.f32.mrb[3].mxu0  ;;  %v1546_v27 = vmul.f32 %v1516_v45, %v4489_v8  ;;  %v1543_v24 = vmul.f32 %v1516_v45, %v4491_v17  ;;  %v1525_v23 = vmul.f32 %v1516_v45, %v4441_v29  ;;  %v1528_v20 = vmul.f32 %v1516_v45, %v4449_v43 }
 0x16f   : > { %v1625_v10 = vrot.slane %v1305_v31, %v5362_v47  ;;  %v1307_v0 = vpop.f32.mrb[2].mxu1 }
 0x170   : > { %v1570_v1 = vadd.f32 %v1546_v27, %v1461_v53  ;;  %v1567_v16 = vadd.f32 %v1543_v24, %v1458_v51  ;;  %v1308_v5 = vpop.f32.mrb[3].mxu1  ;;  %v1549_v35 = vadd.f32 %v1525_v23, %v1440_v57  ;;  %v1552_v6 = vadd.f32 %v1528_v20, %v1443_v32 }
 0x171   : > { %v1655_v28 = vmul.f32 %v1625_v10, %v4493_v61  ;;  %v1652_v49 = vmul.f32 %v1625_v10, %v4502_v40  ;;  %v1634_v31 = vmul.f32 %v1625_v10, %v4458_v46  ;;  %v1637_v0 = vmul.f32 %v1625_v10, %v4455_v7 }
 0x172   : > { %v1531_v5 = vmul.f32 %v1516_v45, %v4467_v19  ;;  %v1534_v51 = vmul.f32 %v1516_v45, %v4465_v41  ;;  %v1455_v53 = vmul.f32 %v4473_v25, %v5361_v58  ;;  %v1452_v57 = vmul.f32 %v4475_v26, %v5361_v58 }
 0x173   : > { %v1679_v2 = vadd.f32 %v1655_v28, %v1570_v1  ;;  %v1676_v27 = vadd.f32 %v1652_v49, %v1567_v16  ;;  %v1658_v23 = vadd.f32 %v1634_v31, %v1549_v35  ;;  %v1661_v24 = vadd.f32 %v1637_v0, %v1552_v6 }
 0x174   : > { %v1555_v48 = vadd.f32 %v1531_v5, %v1446_v12  ;;  %v1640_v20 = vmul.f32 %v1625_v10, %v4471_v22  ;;  %v1558_v50 = vadd.f32 %v1534_v51, %v1449_v9  ;;  %v1643_v49 = vmul.f32 %v1625_v10, %v4469_v21 }
 0x175   : > { %v1682_v32 = vmax.f32 %v1658_v23, 0.0  ;;  %v1685_v55 = vmax.f32 %v1661_v24, 0.0  ;;  %v1703_v16 = vmax.f32 %v1679_v2, 0.0  ;;  %v1700_v1 = vmax.f32 %v1676_v27, 0.0 }
 0x176   : > { %v1664_v35 = vadd.f32 %v1640_v20, %v1555_v48  ;;  %v1537_v6 = vmul.f32 %v1516_v45, %v4479_v34  ;;  %v1667_v31 = vadd.f32 %v1643_v49, %v1558_v50  ;;  %v1540_v0 = vmul.f32 %v1516_v45, %v4477_v30  ;;  %v5364_v45 = vld [vmem:[#allocation11_spill] sm:$0xff] }
 0x177   : > { %v4530_v28 = vpack.c.bf16 %v1685_v55, %v1682_v32  ;;  %v1646_v58 = vmul.f32 %v1625_v10, %v4483_v39  ;;  %v1649_v9 = vmul.f32 %v1625_v10, %v4481_v38  ;;  %v4535_v51 = vpack.c.bf16 %v1703_v16, %v1700_v1 }
 0x178   : > { %v1688_v12 = vmax.f32 %v1664_v35, 0.0  ;;  %v1561_v5 = vadd.f32 %v1537_v6, %v1452_v57  ;;  %v1691_v60 = vmax.f32 %v1667_v31, 0.0  ;;  %v1564_v23 = vadd.f32 %v1540_v0, %v1455_v53 }
 0x179   : > { %5363 = vst [vmem:[#allocation9_spill] sm:$0xff] %v4535_v51  ;;  %v1520_v50 = vrot.slane %v1223_v42, %v5362_v47  ;;  %v1441_v32 = vmul.f32 %v4444_v33, %v5364_v45  ;;  %v1442_v53 = vmul.f32 %v4444_v33, %v4175_v59  ;;  %v1444_v10 = vmul.f32 %v4451_v44, %v5364_v45 }
 0x17a   : > { %v1670_v24 = vadd.f32 %v1646_v58, %v1561_v5  ;;  %v4537_v2 = vpack.c.bf16 %v1691_v60, %v1688_v12  ;;  %v1673_v48 = vadd.f32 %v1649_v9, %v1564_v23  ;;  %v1445_v60 = vmul.f32 %v4451_v44, %v4175_v59 }
 0x17b   : > { %v1450_v57 = vmul.f32 %v4461_v15, %v5364_v45  ;;  %v1451_v49 = vmul.f32 %v4461_v15, %v4175_v59  ;;  %v1447_v42 = vmul.f32 %v4463_v18, %v5364_v45  ;;  %v1448_v16 = vmul.f32 %v4463_v18, %v4175_v59 }
 0x17c   : > { %v1694_v27 = vmax.f32 %v1670_v24, 0.0  ;;  %v1697_v55 = vmax.f32 %v1673_v48, 0.0  ;;  %v1456_v33 = vmul.f32 %v4473_v25, %v5364_v45  ;;  %v1457_v1 = vmul.f32 %v4473_v25, %v4175_v59 }
 0x17d   : > { %v1524_v44 = vrot.slane %v4504_v37, %v5362_v47  ;;  %v1453_v35 = vmul.f32 %v4475_v26, %v5364_v45  ;;  %v1454_v15 = vmul.f32 %v4475_v26, %v4175_v59  ;;  %v1462_v6 = vmul.f32 %v4485_v4, %v5364_v45 }
 0x17e   : > { %v4539_v20 = vpack.c.bf16 %v1697_v55, %v1694_v27  ;;  %v1526_v18 = vmul.f32 %v1520_v50, %v4441_v29  ;;  %v1463_v31 = vmul.f32 %v4485_v4, %v4175_v59  ;;  %v1459_v25 = vmul.f32 %v4487_v62, %v5364_v45 }
 0x17f   : > { %v1460_v37 = vmul.f32 %v4487_v62, %v4175_v59  ;;  %v1529_v0 = vmul.f32 %v1520_v50, %v4449_v43  ;;  %v1532_v58 = vmul.f32 %v1520_v50, %v4467_v19  ;;  %v1535_v26 = vmul.f32 %v1520_v50, %v4465_v41 }
 0x180   : > { %v1538_v12 = vmul.f32 %v1520_v50, %v4479_v34  ;;  %v1541_v5 = vmul.f32 %v1520_v50, %v4477_v30  ;;  %v1544_v23 = vmul.f32 %v1520_v50, %v4491_v17  ;;  %v1547_v4 = vmul.f32 %v1520_v50, %v4489_v8 }
 0x181   : > { %v1527_v9 = vmul.f32 %v1524_v44, %v4441_v29  ;;  %v1530_v24 = vmul.f32 %v1524_v44, %v4449_v43  ;;  %v1550_v48 = vadd.f32 %v1526_v18, %v1441_v32  ;;  %v1533_v59 = vmul.f32 %v1524_v44, %v4467_v19 }
 0x182   : > { %v1536_v62 = vmul.f32 %v1524_v44, %v4465_v41  ;;  %v1539_v27 = vmul.f32 %v1524_v44, %v4479_v34  ;;  %v1553_v55 = vadd.f32 %v1529_v0, %v1444_v10  ;;  %v1542_v45 = vmul.f32 %v1524_v44, %v4477_v30 }
 0x183   : > { %v1545_v3 = vmul.f32 %v1524_v44, %v4491_v17  ;;  %v1548_v52 = vmul.f32 %v1524_v44, %v4489_v8  ;;  %v1556_v14 = vadd.f32 %v1532_v58, %v1447_v42  ;;  %v1559_v50 = vadd.f32 %v1535_v26, %v1450_v57 }
 0x184   : > { %v1562_v63 = vadd.f32 %v1538_v12, %v1453_v35  ;;  %v1565_v29 = vadd.f32 %v1541_v5, %v1456_v33  ;;  %v1568_v43 = vadd.f32 %v1544_v23, %v1459_v25  ;;  %v1571_v32 = vadd.f32 %v1547_v4, %v1462_v6 }
 0x185   : > { %v1551_v18 = vadd.f32 %v1527_v9, %v1442_v53  ;;  %v1554_v19 = vadd.f32 %v1530_v24, %v1445_v60  ;;  %v1557_v34 = vadd.f32 %v1533_v59, %v1448_v16  ;;  %v1560_v10 = vadd.f32 %v1536_v62, %v1451_v49 }
 0x186   : > { %v1563_v0 = vadd.f32 %v1539_v27, %v1454_v15  ;;  %v1566_v36 = vadd.f32 %v1542_v45, %v1457_v1  ;;  %v4594_v8 = vadd.f32 %v1545_v3, %v1460_v37  ;;  %v4596_v57 = vadd.f32 %v1548_v52, %v1463_v31 }
 0x1cb   : > { %v1385_v11 = vpop.f32.mrb[4].mxu0 }
 0x1cc   : > { %v1629_v41 = vrot.slane %v1385_v11, %v5362_v47  ;;  %v1387_v51 = vpop.f32.mrb[5].mxu0 }
 0x1cd   : > { %v1633_v30 = vrot.slane %v1387_v51, %v5362_v47  ;;  %v1389_v17 = vpop.f32.mrb[6].mxu0 }
 0x1ce   : > { %v1390_v42 = vpop.f32.mrb[7].mxu0  ;;  %v1635_v33 = vmul.f32 %v1629_v41, %v4458_v46  ;;  %v1638_v53 = vmul.f32 %v1629_v41, %v4455_v7  ;;  %v1641_v60 = vmul.f32 %v1629_v41, %v4471_v22  ;;  %v1644_v11 = vmul.f32 %v1629_v41, %v4469_v21 }
 0x1cf   : > { %v1647_v49 = vmul.f32 %v1629_v41, %v4483_v39  ;;  %v1650_v16 = vmul.f32 %v1629_v41, %v4481_v38  ;;  %v1653_v47 = vmul.f32 %v1629_v41, %v4502_v40  ;;  %v1656_v3 = vmul.f32 %v1629_v41, %v4493_v61 }
 0x1d0   : > { %v1659_v51 = vadd.f32 %v1635_v33, %v1550_v48  ;;  %v1662_v52 = vadd.f32 %v1638_v53, %v1553_v55  ;;  %v1665_v1 = vadd.f32 %v1641_v60, %v1556_v14  ;;  %v1668_v44 = vadd.f32 %v1644_v11, %v1559_v50  ;;  %v3686_v11 = vld [vmem:[#allocation3 + $0x330] ss:$24 sps:$4 sm:$0xff]  }
 0x1d1   : > { %v1671_v35 = vadd.f32 %v1647_v49, %v1562_v63  ;;  %v1674_v15 = vadd.f32 %v1650_v16, %v1565_v29  ;;  %v1677_v6 = vadd.f32 %v1653_v47, %v1568_v43  ;;  %v1680_v31 = vadd.f32 %v1656_v3, %v1571_v32  ;;  %v3682_v43 = vld [vmem:[#allocation3 + $0x300] ss:$24 sps:$4 sm:$0xff]  }
 0x1d2   : > { %v1683_v25 = vmax.f32 %v1659_v51, 0.0  ;;  %v1686_v37 = vmax.f32 %v1662_v52, 0.0  ;;  %v1689_v58 = vmax.f32 %v1665_v1, 0.0  ;;  %v1692_v26 = vmax.f32 %v1668_v44, 0.0  ;;  %v3687_v49 = vld [vmem:[#allocation3 + $0x338] ss:$24 sps:$4 sm:$0xff]  }
 0x1d3   : > { %v1695_v12 = vmax.f32 %v1671_v35, 0.0  ;;  %v1698_v5 = vmax.f32 %v1674_v15, 0.0  ;;  %v1701_v23 = vmax.f32 %v1677_v6, 0.0  ;;  %v1704_v4 = vmax.f32 %v1680_v31, 0.0  ;;  %v3690_v3 = vld [vmem:[#allocation3 + $0x360] ss:$24 sps:$4 sm:$0xff]  }
 0x1d4   : > { %v4606_v9 = vpack.c.bf16 %v1686_v37, %v1683_v25  ;;  %v4608_v24 = vpack.c.bf16 %v1692_v26, %v1689_v58  ;;  %v1636_v48 = vmul.f32 %v1633_v30, %v4458_v46  ;;  %v1639_v14 = vmul.f32 %v1633_v30, %v4455_v7  ;;  %v3692_v51 = vld [vmem:[#allocation3 + $0x394] ss:$24 sps:$4 sm:$0xff]   ;;  %v3694_v1 = vld [vmem:[#allocation3 + $0x390] ss:$24 sps:$4 sm:$0xff]   ;;  %v3696_v35 = vld [vmem:[#allocation3 + $0x3c4] ss:$24 sps:$4 sm:$0xff]  }
 0x1d5   : > { %v4612_v63 = vpack.c.bf16 %v1698_v5, %v1695_v12  ;;  %v4614_v59 = vpack.c.bf16 %v1704_v4, %v1701_v23  ;;  %v1642_v62 = vmul.f32 %v1633_v30, %v4471_v22  ;;  %v1645_v27 = vmul.f32 %v1633_v30, %v4469_v21  ;;  %v3683_v22 = vld [vmem:[#allocation3 + $0x308] ss:$24 sps:$4 sm:$0xff]   ;;  %v3693_v52 = vld [vmem:[#allocation3 + $0x39c] ss:$24 sps:$4 sm:$0xff]   ;;  %v3695_v44 = vld [vmem:[#allocation3 + $0x398] ss:$24 sps:$4 sm:$0xff]  }
 0x1d6   : > { %1750 = vmatprep.mubr.bf16.mxu1 %v4606_v9  ;;  %1896 = vmatprep.mubr.bf16.mxu0 %v4606_v9  ;;  %v1660_v55 = vadd.f32 %v1636_v48, %v1551_v18  ;;  %v1663_v45 = vadd.f32 %v1639_v14, %v1554_v19  ;;  %v1648_v50 = vmul.f32 %v1633_v30, %v4483_v39  ;;  %v3697_v15 = vld [vmem:[#allocation3 + $0x3cc] ss:$24 sps:$4 sm:$0xff]   ;;  %v3698_v6 = vld [vmem:[#allocation3 + $0x3c0] ss:$24 sps:$4 sm:$0xff]  }
 0x1d7   : > { %1751 = vmatmul.mubr.bf16.vlgmr.msra.gmra.mrb[4].mxu1 %v4530_v28  ;;  %1897 = vmatmul.mubr.bf16.vlgmr.msra.gmra.mrb[8].mxu0 %v4530_v28  ;;  %v1666_v7 = vadd.f32 %v1642_v62, %v1557_v34  ;;  %v1669_v46 = vadd.f32 %v1645_v27, %v1560_v10  ;;  %v1651_v29 = vmul.f32 %v1633_v30, %v4481_v38  ;;  %v3684_v10 = vld [vmem:[#allocation3 + $0x334] ss:$24 sps:$4 sm:$0xff]   ;;  %v5365_v25 = vld [vmem:[#allocation25_spill] sm:$0xff]  ;;  %v5366_v37 = vld [vmem:[#allocation24_spill] sm:$0xff] }
 0x1d8   : > { %1792 = vmatpush1.bf16.msra.mxu1 %v3682_v43  ;;  %1938 = vmatpush1.bf16.msra.mxu0 %v3683_v22  ;;  %v1684_v21 = vmax.f32 %v1660_v55, 0.0  ;;  %v1687_v32 = vmax.f32 %v1663_v45, 0.0  ;;  %v1672_v41 = vadd.f32 %v1648_v50, %v1563_v0  ;;  %v1654_v18 = vmul.f32 %v1633_v30, %v4502_v40  ;;  %v3685_v38 = vld [vmem:[#allocation3 + $0x33c] ss:$24 sps:$4 sm:$0xff]   ;;  %v5367_v58 = vld [vmem:[#allocation26_spill] sm:$0xff]  ;;  %v5368_v26 = vld [vmem:[#allocation9_spill] sm:$0xff] }
 0x1d9   : > { %1760 = vmatprep.mubr.bf16.mxu1 %v4608_v24  ;;  %1906 = vmatprep.mubr.bf16.mxu0 %v4608_v24  ;;  %v1690_v39 = vmax.f32 %v1666_v7, 0.0  ;;  %v1693_v19 = vmax.f32 %v1669_v46, 0.0  ;;  %v1675_v17 = vadd.f32 %v1651_v29, %v1566_v36  ;;  %v1657_v34 = vmul.f32 %v1633_v30, %v4493_v61  ;;  %v3688_v61 = vld [vmem:[#allocation3 + $0x364] ss:$24 sps:$4 sm:$0xff]   ;;  %v3699_v31 = vld [vmem:[#allocation3 + $0x3f4] ss:$24 sps:$4 sm:$0xff]  }
 0x1da   : > { %1793 = vmatprep.subr.bf16.mxu1 %v3684_v10  ;;  %1939 = vmatprep.subr.bf16.mxu0 %v3685_v38  ;;  %v4628_v42 = vpack.c.bf16 %v1687_v32, %v1684_v21  ;;  %v1696_v33 = vmax.f32 %v1672_v41, 0.0  ;;  %v1678_v0 = vadd.f32 %v1654_v18, %v4594_v8  ;;  %v3689_v30 = vld [vmem:[#allocation3 + $0x36c] ss:$24 sps:$4 sm:$0xff]   ;;  %v5371_v5 = vld [vmem:[#allocation28_spill] sm:$0xff]  ;;  %v5378_v62 = vld [vmem:[#allocation35_spill] sm:$0xff] }
 0x1db   : > { %v4631_v53 = vpack.c.bf16 %v1693_v19, %v1690_v39  ;;  %v1699_v40 = vmax.f32 %v1675_v17, 0.0  ;;  %v1681_v60 = vadd.f32 %v1657_v34, %v4596_v57  ;;  %v3691_v57 = vld [vmem:[#allocation3 + $0x368] ss:$24 sps:$4 sm:$0xff]   ;;  %v5382_v50 = vld [vmem:[#allocation39_spill] sm:$0xff] }
 0x1dc   : > { %1794 = vmatpush1.bf16.msra.mxu1 %v3686_v11  ;;  %1940 = vmatpush1.bf16.msra.mxu0 %v3687_v49  ;;  %v1702_v36 = vmax.f32 %v1678_v0, 0.0  ;;  %v5370_v12 = vld [vmem:[#allocation29_spill] sm:$0xff]  ;;  %v5372_v23 = vld [vmem:[#allocation30_spill] sm:$0xff]  ;;  %v5376_v48 = vld [vmem:[#allocation32_spill] sm:$0xff] }
 0x1dd   : > { %1795 = vmatprep.subr.bf16.mxu1 %v3688_v61  ;;  %1941 = vmatprep.subr.bf16.mxu0 %v3689_v30  ;;  %v4634_v16 = vpack.c.bf16 %v1699_v40, %v1696_v33  ;;  %v1705_v47 = vmax.f32 %v1681_v60, 0.0  ;;  %v5375_v4 = vld [vmem:[#allocation33_spill] sm:$0xff]  ;;  %v5377_v14 = vld [vmem:[#allocation34_spill] sm:$0xff]  ;;  %v5379_v27 = vld [vmem:[#allocation36_spill] sm:$0xff] }
 0x1de   : > { %v5380_v55 = vld [vmem:[#allocation37_spill] sm:$0xff]  ;;  %v5381_v45 = vld [vmem:[#allocation38_spill] sm:$0xff]  ;;  %v5383_v7 = vld [vmem:[#allocation40_spill] sm:$0xff] }
 0x1df   : > { %1761 = vmatmul.mubr.bf16.gmra.mrb[8].mxu1 %v4537_v2  ;;  %1907 = vmatmul.mubr.bf16.gmra.mrb[12].mxu0 %v4537_v2  ;;  %v4638_v8 = vpack.c.bf16 %v1705_v47, %v1702_v36  ;;  %v5384_v46 = vld [vmem:[#allocation41_spill] sm:$0xff]  ;;  %v5385_v29 = vld [vmem:[#allocation42_spill] sm:$0xff]  ;;  %v5386_v43 = vld [vmem:[#allocation43_spill] sm:$0xff] }
 0x1e0   : > { %1796 = vmatpush1.bf16.msra.mxu1 %v3690_v3  ;;  %1942 = vmatpush1.bf16.msra.mxu0 %v3691_v57  ;;  %v5387_v22 = vld [vmem:[#allocation44_spill] sm:$0xff]  ;;  %v5388_v21 = vld [vmem:[#allocation45_spill] sm:$0xff]  ;;  %v5389_v32 = vld [vmem:[#allocation46_spill] sm:$0xff] }
 0x1e1   : > { %1770 = vmatprep.mubr.bf16.mxu1 %v4612_v63  ;;  %1916 = vmatprep.mubr.bf16.mxu0 %v4612_v63  ;;  %v5390_v41 = vld [vmem:[#allocation47_spill] sm:$0xff]  ;;  %v5391_v18 = vld [vmem:[#allocation48_spill] sm:$0xff]  ;;  %v5392_v39 = vld [vmem:[#allocation49_spill] sm:$0xff] }
 0x1e2   : > { %1797 = vmatprep.subr.bf16.mxu1 %v3692_v51  ;;  %1943 = vmatprep.subr.bf16.mxu0 %v3693_v52  ;;  %v5393_v19 = vld [vmem:[#allocation50_spill] sm:$0xff]  ;;  %v5394_v17 = vld [vmem:[#allocation51_spill] sm:$0xff]  ;;  %v5395_v34 = vld [vmem:[#allocation52_spill] sm:$0xff] }
 0x1e3   : > { %v5396_v10 = vld [vmem:[#allocation53_spill] sm:$0xff]  ;;  %v5397_v38 = vld [vmem:[#allocation54_spill] sm:$0xff]  ;;  %v5398_v33 = vld [vmem:[#allocation55_spill] sm:$0xff] }
 0x1e4   : > { %1798 = vmatpush1.bf16.msra.mxu1 %v3694_v1  ;;  %1944 = vmatpush1.bf16.msra.mxu0 %v3695_v44  ;;  %v5399_v0 = vld [vmem:[#allocation56_spill] sm:$0xff]  ;;  %v5401_v40 = vld [vmem:[#allocation58_spill] sm:$0xff]  ;;  %v5402_v60 = vld [vmem:[#allocation59_spill] sm:$0xff] }
 0x1e5   : > { %1799 = vmatprep.subr.bf16.mxu1 %v3696_v35  ;;  %1945 = vmatprep.subr.bf16.mxu0 %v3697_v15  ;;  %v5403_v11 = vld [vmem:[#allocation60_spill] sm:$0xff]  ;;  %v5404_v49 = vld [vmem:[#allocation61_spill] sm:$0xff]  ;;  %v5405_v36 = vld [vmem:[#allocation62_spill] sm:$0xff] }
 0x1e6   : > { %v5406_v61 = vld [vmem:[#allocation63_spill] sm:$0xff]  ;;  %v5407_v30 = vld [vmem:[#allocation64_spill] sm:$0xff]  ;;  %v5408_v47 = vld [vmem:[#allocation65_spill] sm:$0xff] }
 0x1e7   : > { %1771 = vmatmul.mubr.bf16.gmra.mrb[12].mxu1 %v4539_v20  ;;  %1917 = vmatmul.mubr.bf16.gmra.mrb[16].mxu0 %v4539_v20  ;;  %v5409_v3 = vld [vmem:[#allocation66_spill] sm:$0xff]  ;;  %v5410_v57 = vld [vmem:[#allocation67_spill] sm:$0xff]  ;;  %v5411_v51 = vld [vmem:[#allocation68_spill] sm:$0xff] }
 0x1e8   : > { %1800 = vmatpush1.bf16.msra.mxu1 %v3698_v6  ;;  %1946 = vmatpush1.bf16.msra.mxu0 %v4132_v56  ;;  %v5369_v56 = vld [vmem:[#allocation27_spill] sm:$0xff]  ;;  %v5412_v52 = vld [vmem:[#allocation69_spill] sm:$0xff]  ;;  %v5413_v1 = vld [vmem:[#allocation70_spill] sm:$0xff] }
 0x1e9   : > { %1780 = vmatprep.mubr.bf16.mxu1 %v4614_v59  ;;  %1926 = vmatprep.mubr.bf16.mxu0 %v4614_v59  ;;  %v5414_v44 = vld [vmem:[#allocation71_spill] sm:$0xff]  ;;  %v5415_v35 = vld [vmem:[#allocation72_spill] sm:$0xff] }
 0x1ea   : > { %1801 = vmatprep.subr.bf16.mxu1 %v3699_v31  ;;  %1947 = vmatprep.subr.bf16.mxu0 %v4137_v54  ;;  %v5373_v54 = vmov 0   ;;  %v5418_v15 = vld [vmem:[#allocation75_spill] sm:$0xff]  ;;  %v5419_v6 = vld [vmem:[#allocation76_spill] sm:$0xff] }
 0x1eb   : > { %v5422_v31 = vld [vmem:[#allocation79_spill] sm:$0xff] }
 0x1ec   : > { %1802 = vmatpush1.bf16.msra.mxu1 %v4142_v13  ;;  %1948 = vmatpush1.bf16.msra.mxu0 %v5365_v25  ;;  %v5374_v13 = vld [vmem:[#allocation31_spill] sm:$0xff]  ;;  %v5423_v25 = vld [vmem:[#allocation80_spill] sm:$0xff] }
 0x1ed   : > { %1803 = vmatprep.subr.bf16.mxu1 %v5366_v37  ;;  %1949 = vmatprep.subr.bf16.mxu0 %v5367_v58 }
 0x1ef   : > { %1781 = vmatmul.mubr.bf16.gmra.mrb[16].mxu1 %v5368_v26  ;;  %1927 = vmatmul.mubr.bf16.gmra.mrb[20].mxu0 %v5368_v26 }
 0x1f0   : > { %1804 = vmatpush1.bf16.msra.mxu1 %v5369_v56  ;;  %1950 = vmatpush1.bf16.msra.mxu0 %v5370_v12 }
 0x1f1   : > { %1805 = vmatprep.subr.bf16.mxu1 %v5371_v5  ;;  %1951 = vmatprep.subr.bf16.mxu0 %v5372_v23 }
 0x1f2   : > { %1823 = vmatprep.mubr.bf16.mxu1 %v5373_v54  ;;  %1969 = vmatprep.mubr.bf16.mxu0 %v5373_v54 }
 0x1f4   : > { %1806 = vmatpush1.bf16.msra.mxu1 %v5374_v13  ;;  %1952 = vmatpush1.bf16.msra.mxu0 %v5375_v4 }
 0x1f5   : > { %2365 = vmatprep.subr.bf16.mxu0 %v4606_v9  ;;  %2010 = vmatprep.subr.bf16.mxu1 %v5376_v48 }
 0x1f7   : > { %1824 = vmatmul.mubr.bf16.vlgmr.msra.gmra.mrb[4].mxu1 %v4628_v42  ;;  %1970 = vmatmul.mubr.bf16.vlgmr.msra.gmra.mrb[8].mxu0 %v4628_v42 }
 0x1f8   : > { %2011 = vmatpush1.bf16.msra.mxu1 %v5377_v14  ;;  %2366 = vmatpush1.bf16.msra.mxu0 %v4530_v28 }
 0x1f9   : > { %2367 = vmatprep.subr.bf16.mxu0 %v4608_v24  ;;  %2012 = vmatprep.subr.bf16.mxu1 %v5378_v62 }
 0x1fa   : > { %1833 = vmatprep.mubr.bf16.mxu1 %v5373_v54  ;;  %1979 = vmatprep.mubr.bf16.mxu0 %v5373_v54 }
 0x1fc   : > { %2013 = vmatpush1.bf16.msra.mxu1 %v5379_v27  ;;  %2368 = vmatpush1.bf16.msra.mxu0 %v4537_v2 }
 0x1fd   : > { %2369 = vmatprep.subr.bf16.mxu0 %v4612_v63  ;;  %2014 = vmatprep.subr.bf16.mxu1 %v5380_v55 }
 0x1ff   : > { %1834 = vmatmul.mubr.bf16.gmra.mrb[8].mxu1 %v4631_v53  ;;  %1980 = vmatmul.mubr.bf16.gmra.mrb[12].mxu0 %v4631_v53 }
 0x200   : > { %2015 = vmatpush1.bf16.msra.mxu1 %v5381_v45  ;;  %2370 = vmatpush1.bf16.msra.mxu0 %v4539_v20 }
 0x201   : > { %2371 = vmatprep.subr.bf16.mxu0 %v4614_v59  ;;  %2016 = vmatprep.subr.bf16.mxu1 %v5382_v50 }
 0x202   : > { %1843 = vmatprep.mubr.bf16.mxu1 %v5373_v54  ;;  %1989 = vmatprep.mubr.bf16.mxu0 %v5373_v54 }
 0x204   : > { %2017 = vmatpush1.bf16.msra.mxu1 %v5383_v7  ;;  %2372 = vmatpush1.bf16.msra.mxu0 %v5368_v26 }
 0x205   : > { %2018 = vmatprep.subr.bf16.mxu1 %v5384_v46 }
 0x207   : > { %1844 = vmatmul.mubr.bf16.gmra.mrb[12].mxu1 %v4634_v16  ;;  %1990 = vmatmul.mubr.bf16.gmra.mrb[16].mxu0 %v4634_v16 }
 0x208   : > { %2019 = vmatpush1.bf16.msra.mxu1 %v5385_v29  ;;  %1853 = vmatprep.mubr.bf16.mxu1 %v5373_v54 }
 0x209   : > { %2020 = vmatprep.subr.bf16.mxu1 %v5386_v43  ;;  %1999 = vmatprep.mubr.bf16.mxu0 %v5373_v54 }
 0x20c   : > { %2021 = vmatpush1.bf16.msra.mxu1 %v5387_v22 }
 0x20d   : > { %2022 = vmatprep.subr.bf16.mxu1 %v5388_v21 }
 0x20f   : > { %1854 = vmatmul.mubr.bf16.gmra.mrb[16].mxu1 %v4638_v8  ;;  %2000 = vmatmul.mubr.bf16.gmra.mrb[20].mxu0 %v4638_v8 }
 0x210   : > { %2023 = vmatpush1.bf16.msra.mxu1 %v5389_v32  ;;  %2042 = vmatprep.mubr.bf16.mxu1 %v4606_v9  ;;  %v5400_v9 = vld [vmem:[#allocation57_spill] sm:$0xff] }
 0x211   : > { %2024 = vmatprep.subr.bf16.mxu1 %v5390_v41 }
 0x214   : > { %2025 = vmatpush1.bf16.msra.mxu1 %v5391_v18 }
 0x215   : > { %2026 = vmatprep.subr.bf16.mxu1 %v5392_v39 }
 0x218   : > { %2027 = vmatpush1.bf16.msra.mxu1 %v5393_v19 }
 0x219   : > { %2028 = vmatprep.subr.bf16.mxu1 %v5394_v17 }
 0x21c   : > { %2029 = vmatpush1.bf16.msra.mxu1 %v5395_v34 }
 0x21d   : > { %2030 = vmatprep.subr.bf16.mxu1 %v5396_v10 }
 0x220   : > { %2031 = vmatpush1.bf16.msra.mxu1 %v5397_v38 }
 0x221   : > { %2032 = vmatprep.subr.bf16.mxu1 %v5398_v33 }
 0x224   : > { %2033 = vmatpush1.bf16.msra.mxu1 %v5399_v0 }
 0x225   : > { %2034 = vmatprep.subr.bf16.mxu1 %v5400_v9 }
 0x228   : > { %2035 = vmatpush1.bf16.msra.mxu1 %v5401_v40 }
 0x229   : > { %2036 = vmatprep.subr.bf16.mxu1 %v5402_v60 }
 0x22c   : > { %2037 = vmatpush1.bf16.msra.mxu1 %v5403_v11 }
 0x22d   : > { %2038 = vmatprep.subr.bf16.mxu1 %v5404_v49 }
 0x230   : > { %2039 = vmatpush1.bf16.msra.mxu1 %v5405_v36 }
 0x231   : > { %2040 = vmatprep.subr.bf16.mxu1 %v5406_v61 }
 0x234   : > { %2041 = vmatpush1.bf16.msra.mxu1 %v5407_v30 }
 0x235   : > { %2083 = vmatprep.subr.bf16.mxu1 %v5408_v47 }
 0x237   : > { %2043 = vmatmul.mubr.bf16.vlgmr.msra.gmra.mrb[20].mxu1 %v4530_v28  ;;  %v5416_v28 = vld [vmem:[#allocation73_spill] sm:$0xff] }
 0x238   : > { %2052 = vmatprep.mubr.bf16.mxu1 %v4608_v24  ;;  %2084 = vmatpush1.bf16.msra.mxu1 %v5409_v3  ;;  %v5417_v24 = vld [vmem:[#allocation74_spill] sm:$0xff] }
 0x239   : > { %2085 = vmatprep.subr.bf16.mxu1 %v5410_v57 }
 0x23c   : > { %2086 = vmatpush1.bf16.msra.mxu1 %v5411_v51 }
 0x23d   : > { %2087 = vmatprep.subr.bf16.mxu1 %v5412_v52 }
 0x23f   : > { %2053 = vmatmul.mubr.bf16.gmra.mrb[24].mxu1 %v4537_v2  ;;  %v5420_v2 = vld [vmem:[#allocation77_spill] sm:$0xff] }
 0x240   : > { %2062 = vmatprep.mubr.bf16.mxu1 %v4612_v63  ;;  %2088 = vmatpush1.bf16.msra.mxu1 %v5413_v1  ;;  %v5421_v63 = vld [vmem:[#allocation78_spill] sm:$0xff] }
 0x241   : > { %2089 = vmatprep.subr.bf16.mxu1 %v5414_v44 }
 0x244   : > { %2090 = vmatpush1.bf16.msra.mxu1 %v5415_v35 }
 0x245   : > { %2091 = vmatprep.subr.bf16.mxu1 %v5416_v28 }
 0x247   : > { %2063 = vmatmul.mubr.bf16.gmra.mrb[28].mxu1 %v4539_v20  ;;  %v3651_v20 = vld [vmem:[%s5183_s3 + $0x4] ss:$8 sps:$4 sm:$0xff]  }
 0x248   : > { %2072 = vmatprep.mubr.bf16.mxu1 %v4614_v59  ;;  %2092 = vmatpush1.bf16.msra.mxu1 %v5417_v24 }
 0x249   : > { %2093 = vmatprep.subr.bf16.mxu1 %v5418_v15  ;;  %3262 = vmatprep.mubr.msk.bf16.mxu0 %vm2340_vm0, %v3651_v20 }
 0x24c   : > { %2094 = vmatpush1.bf16.msra.mxu1 %v5419_v6 }
 0x24d   : > { %2095 = vmatprep.subr.bf16.mxu1 %v5420_v2 }
 0x24f   : > { %2073 = vmatmul.mubr.bf16.gmra.mrb[32].mxu1 %v5368_v26 }
 0x250   : > { %2096 = vmatpush1.bf16.msra.mxu1 %v5421_v63  ;;  %2115 = vmatprep.mubr.bf16.mxu1 %v5373_v54 }
 0x251   : > { %2097 = vmatprep.subr.bf16.mxu1 %v5422_v31 }
 0x254   : > { %2098 = vmatpush1.bf16.msra.mxu1 %v5423_v25 }
 0x255   : > { %2478 = vmatprep.subr.bf16.mxu1 %v5373_v54 }
 0x257   : > { %2116 = vmatmul.mubr.bf16.vlgmr.msra.gmra.mrb[20].mxu1 %v4628_v42 }
 0x258   : > { %2479 = vmatpush1.bf16.msra.mxu1 %v4628_v42  ;;  %2125 = vmatprep.mubr.bf16.mxu1 %v5373_v54 }
 0x259   : > { %2480 = vmatprep.subr.bf16.mxu1 %v5373_v54 }
 0x25c   : > { %2481 = vmatpush1.bf16.msra.mxu1 %v4631_v53 }
 0x25d   : > { %2482 = vmatprep.subr.bf16.mxu1 %v5373_v54 }
 0x25f   : > { %2126 = vmatmul.mubr.bf16.gmra.mrb[24].mxu1 %v4631_v53 }
 0x260   : > { %2483 = vmatpush1.bf16.msra.mxu1 %v4634_v16  ;;  %2135 = vmatprep.mubr.bf16.mxu1 %v5373_v54 }
 0x261   : > { %2484 = vmatprep.subr.bf16.mxu1 %v5373_v54 }
 0x264   : > { %2485 = vmatpush1.bf16.msra.mxu1 %v4638_v8 }
 0x265   : > { %2486 = vmatprep.subr.bf16.mxu1 %v5373_v54 }
 0x267   : > { %2136 = vmatmul.mubr.bf16.gmra.mrb[28].mxu1 %v4634_v16 }
 0x268   : > { %2145 = vmatprep.mubr.bf16.mxu1 %v5373_v54 }
 0x26f   : > { %2146 = vmatmul.mubr.bf16.gmra.mrb[32].mxu1 %v4638_v8 }
 0x270   : > { %3270 = vmatprep.mubr.msk.bf16.mxu1 %vm2340_vm0, %v3651_v20 }
 0x2ca   : > { %v1825_v59 = vpop.f32.mrb[4].mxu1  ;;  %v1971_v42 = vpop.f32.mrb[8].mxu0 }
 0x2cb   : > { %v1827_v53 = vpop.f32.mrb[5].mxu1  ;;  %v4762_v37 = vpop.f32.mrb[9].mxu0 }
 0x2cc   : > { %v1829_v58 = vpop.f32.mrb[6].mxu1  ;;  %v1975_v16 = vpop.f32.mrb[10].mxu0 }
 0x2cd   : > { %v2168_v26 = vpack.c.bf16 %v1829_v58, %v1825_v59  ;;  %v2170_v56 = vpack.c.bf16 %v1975_v16, %v1971_v42  ;;  %v1831_v12 = vpop.f32.mrb[7].mxu1  ;;  %v1977_v8 = vpop.f32.mrb[11].mxu0 }
 0x2ce   : > { %v2169_v5 = vpack.c.bf16 %v1831_v12, %v1827_v53  ;;  %v2192_v23 = vpack.c.bf16 %v1977_v8, %v4762_v37  ;;  %v3649_v8 = vld [vmem:[%s5183_s3] ss:$8 sps:$4 sm:$0xff]  }
 0x2cf   : > { %2487 = vmatpush1.bf16.msra.mxu1 %v2170_v56 }
 0x2d0   : > { %2373 = vmatprep.subr.bf16.mxu0 %v2169_v5  ;;  %2488 = vmatprep.subr.bf16.mxu1 %v5373_v54  ;;  %v3652_v5 = vld [vmem:[%s5183_s3 + $0x14] ss:$8 sps:$4 sm:$0xff]  }
 0x2d1   : > { %2374 = vmatpush1.bf16.msra.mxu0 %v2168_v26 }
 0x2d2   : > { %v1835_v13 = vpop.f32.mrb[8].mxu1  ;;  %v1981_v4 = vpop.f32.mrb[12].mxu0 }
 0x2d3   : > { %v1837_v48 = vpop.f32.mrb[9].mxu1  ;;  %v1983_v14 = vpop.f32.mrb[13].mxu0 }
 0x2d4   : > { %v1839_v62 = vpop.f32.mrb[10].mxu1  ;;  %v1985_v27 = vpop.f32.mrb[14].mxu0 }
 0x2d5   : > { %v2171_v55 = vpack.c.bf16 %v1839_v62, %v1835_v13  ;;  %v2173_v45 = vpack.c.bf16 %v1985_v27, %v1981_v4  ;;  %v1841_v50 = vpop.f32.mrb[11].mxu1  ;;  %v1987_v7 = vpop.f32.mrb[15].mxu0  ;;  %v3657_v13 = vld [vmem:[%s5183_s3 + $0x20] ss:$8 sps:$4 sm:$0xff]   ;;  %v3658_v4 = vld [vmem:[%s5183_s3 + $0x34] ss:$8 sps:$4 sm:$0xff]  }
 0x2d6   : > { %v2172_v46 = vpack.c.bf16 %v1841_v50, %v1837_v48  ;;  %v2195_v29 = vpack.c.bf16 %v1987_v7, %v1983_v14  ;;  %v3660_v48 = vld [vmem:[%s5183_s3 + $0x30] ss:$8 sps:$4 sm:$0xff]   ;;  %v3661_v14 = vld [vmem:[%s5183_s3 + $0x44] ss:$8 sps:$4 sm:$0xff]   ;;  %v3663_v62 = vld [vmem:[%s5183_s3 + $0x40] ss:$8 sps:$4 sm:$0xff]  }
 0x2d7   : > { %2489 = vmatpush1.bf16.msra.mxu1 %v2173_v45  ;;  %v3664_v27 = vld [vmem:[%s5183_s3 + $0x54] ss:$8 sps:$4 sm:$0xff]   ;;  %v3667_v45 = vld [vmem:[%s5183_s3 + $0x64] ss:$8 sps:$4 sm:$0xff]   ;;  %v3669_v50 = vld [vmem:[%s5183_s3 + $0x60] ss:$8 sps:$4 sm:$0xff]  }
 0x2d8   : > { %2375 = vmatprep.subr.bf16.mxu0 %v2172_v46  ;;  %2490 = vmatprep.subr.bf16.mxu1 %v5373_v54  ;;  %v3670_v7 = vld [vmem:[%s5183_s3 + $0x74] ss:$8 sps:$4 sm:$0xff]   ;;  %v3672_v46 = vld [vmem:[%s5183_s3 + $0x70] ss:$8 sps:$4 sm:$0xff]  }
 0x2d9   : > { %2376 = vmatpush1.bf16.msra.mxu0 %v2171_v55  ;;  %v3666_v55 = vld [vmem:[%s5183_s3 + $0x50] ss:$8 sps:$4 sm:$0xff]  }
 0x2da   : > { %v1845_v43 = vpop.f32.mrb[12].mxu1  ;;  %v1991_v22 = vpop.f32.mrb[16].mxu0 }
 0x2db   : > { %v1847_v21 = vpop.f32.mrb[13].mxu1  ;;  %v1993_v32 = vpop.f32.mrb[17].mxu0 }
 0x2dc   : > { %v1849_v41 = vpop.f32.mrb[14].mxu1  ;;  %v1995_v18 = vpop.f32.mrb[18].mxu0 }
 0x2dd   : > { %v2174_v39 = vpack.c.bf16 %v1849_v41, %v1845_v43  ;;  %v2176_v19 = vpack.c.bf16 %v1995_v18, %v1991_v22  ;;  %v1851_v17 = vpop.f32.mrb[15].mxu1  ;;  %v1997_v34 = vpop.f32.mrb[19].mxu0  ;;  %v3278_v43 = vld [vmem:[%s5184_s4 + $0xc0] sm:$0xff]  ;;  %v4840_v22 = vld [vmem:[%s5184_s4 + $0x8] ss:$12 sps:$4 sm:$0xff]  }
 0x2de   : > { %v2175_v10 = vpack.c.bf16 %v1851_v17, %v1847_v21  ;;  %v2198_v38 = vpack.c.bf16 %v1997_v34, %v1993_v32  ;;  %v4845_v21 = vld [vmem:[%s5184_s4 + $0xc8] ss:$12 sps:$4 sm:$0xff]   ;;  %v2840_v41 = vunpack.c.l.bf16 %v3278_v43  ;;  %v2657_v18 = vunpack.c.l.bf16 %v4840_v22 }
 0x2df   : > { %2491 = vmatpush1.bf16.msra.mxu1 %v2176_v19  ;;  %v2841_v34 = vunpack.c.h.bf16 %v3278_v43 }
 0x2e0   : > { %2377 = vmatprep.subr.bf16.mxu0 %v2175_v10  ;;  %2492 = vmatprep.subr.bf16.mxu1 %v5373_v54 }
 0x2e1   : > { %2378 = vmatpush1.bf16.msra.mxu0 %v2174_v39  ;;  %v2625_v39 = vld [vmem:[%s5184_s4 + $0xc] sm:$0xff] }
 0x2e2   : > { %v1855_v33 = vpop.f32.mrb[16].mxu1  ;;  %v2001_v0 = vpop.f32.mrb[20].mxu0 }
 0x2e3   : > { %v1857_v9 = vpop.f32.mrb[17].mxu1  ;;  %v2003_v40 = vpop.f32.mrb[21].mxu0 }
 0x2e4   : > { %v1859_v60 = vpop.f32.mrb[18].mxu1  ;;  %v2005_v11 = vpop.f32.mrb[22].mxu0 }
 0x2e5   : > { %v2177_v49 = vpack.c.bf16 %v1859_v60, %v1855_v33  ;;  %v2179_v36 = vpack.c.bf16 %v2005_v11, %v2001_v0  ;;  %v1861_v61 = vpop.f32.mrb[19].mxu1  ;;  %v2007_v30 = vpop.f32.mrb[23].mxu0  ;;  %v3280_v33 = vld [vmem:[%s5184_s4 + $0xcc] sm:$0xff] }
 0x2e6   : > { %v2178_v47 = vpack.c.bf16 %v1861_v61, %v1857_v9  ;;  %v2201_v3 = vpack.c.bf16 %v2007_v30, %v2003_v40 }
 0x2e7   : > { %2493 = vmatpush1.bf16.msra.mxu1 %v2179_v36  ;;  %v2658_v36 = vunpack.c.l.bf16 %v2625_v39 }
 0x2e8   : > { %2379 = vmatprep.subr.bf16.mxu0 %v2178_v47  ;;  %2494 = vmatprep.subr.bf16.mxu1 %v5373_v54 }
 0x2e9   : > { %2380 = vmatpush1.bf16.msra.mxu0 %v2177_v49 }
 0x32a   : > { %v2117_v57 = vpop.f32.mrb[20].mxu1 }
 0x32b   : > { %v2119_v51 = vpop.f32.mrb[21].mxu1 }
 0x32c   : > { %v2121_v52 = vpop.f32.mrb[22].mxu1 }
 0x32d   : > { %v2193_v1 = vpack.c.bf16 %v2121_v52, %v2117_v57  ;;  %v2123_v44 = vpop.f32.mrb[23].mxu1  ;;  %v2843_v57 = vunpack.c.l.bf16 %v3280_v33 }
 0x32e   : > { %v2194_v35 = vpack.c.bf16 %v2123_v44, %v2119_v51 }
 0x32f   : > { %2381 = vmatprep.subr.bf16.mxu0 %v2193_v1 }
 0x330   : > { %2382 = vmatpush1.bf16.msra.mxu0 %v2192_v23  ;;  %2495 = vmatpush1.bf16.msra.mxu1 %v2194_v35  ;;  %v3655_v23 = vld [vmem:[%s5183_s3 + $0x24] ss:$8 sps:$4 sm:$0xff]  }
 0x331   : > { %2496 = vmatprep.subr.bf16.mxu1 %v5373_v54 }
 0x332   : > { %v2127_v28 = vpop.f32.mrb[24].mxu1 }
 0x333   : > { %v2129_v24 = vpop.f32.mrb[25].mxu1 }
 0x334   : > { %v2131_v15 = vpop.f32.mrb[26].mxu1 }
 0x335   : > { %v2196_v6 = vpack.c.bf16 %v2131_v15, %v2127_v28  ;;  %v2133_v2 = vpop.f32.mrb[27].mxu1  ;;  %v3282_v15 = vld [vmem:[%s5184_s4 + $0xd8] sm:$0xff] }
 0x336   : > { %v2197_v63 = vpack.c.bf16 %v2133_v2, %v2129_v24  ;;  %v2627_v24 = vld [vmem:[%s5184_s4 + $0x18] sm:$0xff]  ;;  %v2844_v2 = vunpack.c.h.bf16 %v3280_v33 }
 0x337   : > { %2383 = vmatprep.subr.bf16.mxu0 %v2196_v6  ;;  %v2659_v6 = vunpack.c.h.bf16 %v2625_v39 }
 0x338   : > { %2384 = vmatpush1.bf16.msra.mxu0 %v2195_v29  ;;  %2497 = vmatpush1.bf16.msra.mxu1 %v2197_v63  ;;  %v2623_v29 = vld [vmem:[%s5184_s4] sm:$0xff]  ;;  %v2660_v63 = vunpack.c.h.bf16 %v4840_v22 }
 0x339   : > { %2498 = vmatprep.subr.bf16.mxu1 %v5373_v54  ;;  %v2655_v32 = vunpack.c.l.bf16 %v2623_v29  ;;  %v2656_v17 = vunpack.c.h.bf16 %v2623_v29 }
 0x33a   : > { %v2137_v31 = vpop.f32.mrb[28].mxu1 }
 0x33b   : > { %v2139_v25 = vpop.f32.mrb[29].mxu1 }
 0x33c   : > { %v2141_v20 = vpop.f32.mrb[30].mxu1 }
 0x33d   : > { %v2199_v59 = vpack.c.bf16 %v2141_v20, %v2137_v31  ;;  %v2143_v42 = vpop.f32.mrb[31].mxu1 }
 0x33e   : > { %v2200_v53 = vpack.c.bf16 %v2143_v42, %v2139_v25  ;;  %v4866_v42 = vld [vmem:[%s5184_s4 + $0x20] ss:$12 sps:$4 sm:$0xff]  }
 0x33f   : > { %2385 = vmatprep.subr.bf16.mxu0 %v2199_v59  ;;  %v2845_v59 = vunpack.c.h.bf16 %v4845_v21 }
 0x340   : > { %2386 = vmatpush1.bf16.msra.mxu0 %v2198_v38  ;;  %2499 = vmatpush1.bf16.msra.mxu1 %v2200_v53  ;;  %v2842_v38 = vunpack.c.l.bf16 %v4845_v21  ;;  %v4871_v53 = vld [vmem:[%s5184_s4 + $0xe0] ss:$12 sps:$4 sm:$0xff]  }
 0x341   : > { %2500 = vmatprep.subr.bf16.mxu1 %v5373_v54  ;;  %v3654_v54 = vld [vmem:[%s5183_s3 + $0x10] ss:$8 sps:$4 sm:$0xff]  }
 0x342   : > { %v2147_v37 = vpop.f32.mrb[32].mxu1 }
 0x343   : > { %v2149_v58 = vpop.f32.mrb[33].mxu1 }
 0x344   : > { %v2151_v16 = vpop.f32.mrb[34].mxu1 }
 0x345   : > { %v2202_v26 = vpack.c.bf16 %v2151_v16, %v2147_v37  ;;  %v2153_v56 = vpop.f32.mrb[35].mxu1  ;;  %v2846_v16 = vunpack.c.l.bf16 %v3282_v15 }
 0x346   : > { %v2203_v12 = vpack.c.bf16 %v2153_v56, %v2149_v58  ;;  %v2661_v58 = vunpack.c.l.bf16 %v2627_v24 }
 0x347   : > { %2387 = vmatprep.subr.bf16.mxu0 %v2202_v26  ;;  %v2662_v26 = vunpack.c.h.bf16 %v2627_v24  ;;  %v4891_v24 = vld [vmem:[%s5184_s4 + $0x38] ss:$12 sps:$4 sm:$0xff]  }
 0x348   : > { %2388 = vmatpush1.bf16.msra.mxu0 %v2201_v3  ;;  %2501 = vmatpush1.bf16.msra.mxu1 %v2203_v12 }
 0x34b   : > { %2398 = vmatmul.mubr.bf16.vlgmr.msra.gmra.mrb[24].mxu0 %v3649_v8  ;;  %2511 = vmatmul.mubr.bf16.vlgmr.msra.gmra.mrb[36].mxu1 %v3649_v8 }
 0x34c   : > { %3263 = vmatprep.mubr.msk.bf16.mxu0 %vm2340_vm0, %v3652_v5  ;;  %3271 = vmatprep.mubr.msk.bf16.mxu1 %vm2340_vm0, %v3652_v5 }
 0x353   : > { %2408 = vmatmul.mubr.bf16.gmra.mrb[28].mxu0 %v3654_v54  ;;  %2519 = vmatmul.mubr.bf16.gmra.mrb[40].mxu1 %v3654_v54 }
 0x354   : > { %3264 = vmatprep.mubr.msk.bf16.mxu0 %vm2340_vm0, %v3655_v23  ;;  %3272 = vmatprep.mubr.msk.bf16.mxu1 %vm2340_vm0, %v3655_v23 }
 0x35b   : > { %2418 = vmatmul.mubr.bf16.gmra.mrb[32].mxu0 %v3657_v13  ;;  %2527 = vmatmul.mubr.bf16.gmra.mrb[44].mxu1 %v3657_v13 }
 0x35c   : > { %3265 = vmatprep.mubr.msk.bf16.mxu0 %vm2340_vm0, %v3658_v4  ;;  %3273 = vmatprep.mubr.msk.bf16.mxu1 %vm2340_vm0, %v3658_v4 }
 0x363   : > { %2428 = vmatmul.mubr.bf16.gmra.mrb[36].mxu0 %v3660_v48  ;;  %2535 = vmatmul.mubr.bf16.gmra.mrb[48].mxu1 %v3660_v48  ;;  %v2847_v48 = vunpack.c.h.bf16 %v3282_v15 }
 0x364   : > { %3266 = vmatprep.mubr.msk.bf16.mxu0 %vm2340_vm0, %v3661_v14  ;;  %3274 = vmatprep.mubr.msk.bf16.mxu1 %vm2340_vm0, %v3661_v14  ;;  %v2663_v14 = vunpack.c.l.bf16 %v4866_v42 }
 0x36b   : > { %2438 = vmatmul.mubr.bf16.gmra.mrb[40].mxu0 %v3663_v62  ;;  %2543 = vmatmul.mubr.bf16.gmra.mrb[52].mxu1 %v3663_v62  ;;  %v2848_v62 = vunpack.c.l.bf16 %v4871_v53 }
 0x36c   : > { %3267 = vmatprep.mubr.msk.bf16.mxu0 %vm2340_vm0, %v3664_v27  ;;  %3275 = vmatprep.mubr.msk.bf16.mxu1 %vm2340_vm0, %v3664_v27 }
 0x373   : > { %2448 = vmatmul.mubr.bf16.gmra.mrb[44].mxu0 %v3666_v55  ;;  %2551 = vmatmul.mubr.bf16.gmra.mrb[56].mxu1 %v3666_v55 }
 0x374   : > { %3268 = vmatprep.mubr.msk.bf16.mxu0 %vm2340_vm0, %v3667_v45  ;;  %3276 = vmatprep.mubr.msk.bf16.mxu1 %vm2340_vm0, %v3667_v45 }
 0x37b   : > { %2458 = vmatmul.mubr.bf16.gmra.mrb[48].mxu0 %v3669_v50  ;;  %2559 = vmatmul.mubr.bf16.gmra.mrb[60].mxu1 %v3669_v50 }
 0x37c   : > { %3269 = vmatprep.mubr.msk.bf16.mxu0 %vm2340_vm0, %v3670_v7  ;;  %3277 = vmatprep.mubr.msk.bf16.mxu1 %vm2340_vm0, %v3670_v7 }
 0x383   : > { %2468 = vmatmul.mubr.bf16.gmra.mrb[52].mxu0 %v3672_v46  ;;  %2567 = vmatmul.mubr.bf16.gmra.mrb[64].mxu1 %v3672_v46 }
 0x41e   : > { %v2399_v19 = vpop.f32.mrb[24].mxu0  ;;  %v2512_v10 = vpop.f32.mrb[36].mxu1 }
 0x41f   : > { %v2575_v0 = vmax.f32 %v2399_v19, 0.0  ;;  %v2401_v9 = vpop.f32.mrb[25].mxu0  ;;  %v2577_v40 = vmax.f32 %v2512_v10, 0.0  ;;  %v2514_v60 = vpop.f32.mrb[37].mxu1 }
 0x420   : > { %v2576_v11 = vmax.f32 %v2401_v9, 0.0  ;;  %v2403_v49 = vpop.f32.mrb[26].mxu0  ;;  %v2515_v61 = vpop.f32.mrb[38].mxu1 }
 0x421   : > { %v2703_v30 = vmul.f32 %v2655_v32, %v2575_v0  ;;  %v2888_v47 = vmul.f32 %v2840_v41, %v2575_v0  ;;  %v2705_v3 = vmul.f32 %v2657_v18, %v2577_v40  ;;  %v2405_v51 = vpop.f32.mrb[27].mxu0  ;;  %v2517_v52 = vpop.f32.mrb[39].mxu1  ;;  %v2890_v35 = vmul.f32 %v2842_v38, %v2577_v40  ;;  %v2629_v32 = vld [vmem:[%s5184_s4 + $0x24] sm:$0xff] }
 0x422   : > { %v2704_v1 = vmul.f32 %v2656_v17, %v2576_v11  ;;  %v2889_v44 = vmul.f32 %v2841_v34, %v2576_v11  ;;  %v2578_v28 = vmax.f32 %v2403_v49, 0.0  ;;  %v2579_v20 = vmax.f32 %v2405_v51, 0.0  ;;  %v3284_v38 = vld [vmem:[%s5184_s4 + $0xe4] sm:$0xff]  ;;  %v3286_v51 = vld [vmem:[%s5184_s4 + $0xf0] sm:$0xff] }
 0x423   : > { %v2580_v37 = vmax.f32 %v2515_v61, 0.0  ;;  %v2664_v9 = vunpack.c.l.bf16 %v2629_v32  ;;  %v2849_v11 = vunpack.c.l.bf16 %v3284_v38 }
 0x424   : > { %v2751_v31 = vadd.f32 %v2704_v1, %v2703_v30  ;;  %v2936_v25 = vadd.f32 %v2889_v44, %v2888_v47  ;;  %v2706_v8 = vmul.f32 %v2658_v36, %v2578_v28  ;;  %v2891_v5 = vmul.f32 %v2843_v57, %v2578_v28  ;;  %v2631_v57 = vld [vmem:[%s5184_s4 + $0x30] sm:$0xff] }
 0x425   : > { %v2707_v50 = vmul.f32 %v2659_v6, %v2579_v20  ;;  %v2892_v7 = vmul.f32 %v2844_v2, %v2579_v20  ;;  %v2708_v43 = vmul.f32 %v2660_v63, %v2580_v37  ;;  %v2893_v22 = vmul.f32 %v2845_v59, %v2580_v37  ;;  %v4899_v20 = vld [vmem:[%s5184_s4 + $0xf8] ss:$12 sps:$4 sm:$0xff]  }
 0x426   : > { %v2752_v56 = vadd.f32 %v2751_v31, %v2705_v3  ;;  %v2937_v12 = vadd.f32 %v2936_v25, %v2890_v35  ;;  %v2409_v54 = vpop.f32.mrb[28].mxu0  ;;  %v2520_v23 = vpop.f32.mrb[40].mxu1  ;;  %v2665_v1 = vunpack.c.h.bf16 %v2629_v32  ;;  %v2850_v44 = vunpack.c.h.bf16 %v3284_v38  ;;  %v3288_v32 = vld [vmem:[%s5184_s4 + $0xfc] sm:$0xff] }
 0x427   : > { %v2581_v13 = vmax.f32 %v2409_v54, 0.0  ;;  %v2411_v4 = vpop.f32.mrb[29].mxu0  ;;  %v2522_v27 = vpop.f32.mrb[41].mxu1  ;;  %v2583_v18 = vmax.f32 %v2520_v23, 0.0  ;;  %v2666_v35 = vunpack.c.h.bf16 %v4866_v42  ;;  %v2851_v31 = vunpack.c.h.bf16 %v4871_v53 }
 0x428   : > { %v2753_v55 = vadd.f32 %v2752_v56, %v2706_v8  ;;  %v2938_v45 = vadd.f32 %v2937_v12, %v2891_v5  ;;  %v2413_v46 = vpop.f32.mrb[30].mxu0  ;;  %v2523_v29 = vpop.f32.mrb[42].mxu1  ;;  %v2582_v21 = vmax.f32 %v2411_v4, 0.0  ;;  %v2668_v54 = vunpack.c.h.bf16 %v2631_v57 }
 0x429   : > { %v2415_v41 = vpop.f32.mrb[31].mxu0  ;;  %v2525_v39 = vpop.f32.mrb[43].mxu1  ;;  %v2709_v34 = vmul.f32 %v2661_v58, %v2581_v13  ;;  %v2894_v10 = vmul.f32 %v2846_v16, %v2581_v13  ;;  %v2584_v60 = vmax.f32 %v2413_v46, 0.0  ;;  %v2711_v49 = vmul.f32 %v2663_v14, %v2583_v18 }
 0x42a   : > { %v2754_v19 = vadd.f32 %v2753_v55, %v2707_v50  ;;  %v2939_v17 = vadd.f32 %v2938_v45, %v2892_v7  ;;  %v2710_v40 = vmul.f32 %v2662_v26, %v2582_v21  ;;  %v2895_v30 = vmul.f32 %v2847_v48, %v2582_v21  ;;  %v2633_v7 = vld [vmem:[%s5184_s4 + $0x3c] sm:$0xff] }
 0x42b   : > { %v2896_v47 = vmul.f32 %v2848_v62, %v2583_v18  ;;  %v2585_v63 = vmax.f32 %v2415_v41, 0.0  ;;  %v2712_v42 = vmul.f32 %v2664_v9, %v2584_v60  ;;  %v2586_v37 = vmax.f32 %v2523_v29, 0.0 }
 0x42c   : > { %v2755_v33 = vadd.f32 %v2754_v19, %v2708_v43  ;;  %v2940_v0 = vadd.f32 %v2939_v17, %v2893_v22  ;;  %v2667_v58 = vunpack.c.l.bf16 %v2631_v57  ;;  %v2852_v16 = vunpack.c.l.bf16 %v3286_v51  ;;  %v3290_v57 = vld [vmem:[%s5184_s4 + $0x108] sm:$0xff] }
 0x42d   : > { %v2897_v12 = vmul.f32 %v2849_v11, %v2584_v60  ;;  %v2853_v23 = vunpack.c.h.bf16 %v3286_v51  ;;  %v2669_v13 = vunpack.c.l.bf16 %v4891_v24  ;;  %v2854_v4 = vunpack.c.l.bf16 %v4899_v20 }
 0x42e   : > { %v2756_v36 = vadd.f32 %v2755_v33, %v2709_v34  ;;  %v2941_v61 = vadd.f32 %v2940_v0, %v2894_v10  ;;  %v2419_v3 = vpop.f32.mrb[32].mxu0  ;;  %v2528_v52 = vpop.f32.mrb[44].mxu1  ;;  %v2713_v48 = vmul.f32 %v2665_v1, %v2585_v63  ;;  %v2898_v14 = vmul.f32 %v2850_v44, %v2585_v63 }
 0x42f   : > { %v2421_v28 = vpop.f32.mrb[33].mxu0  ;;  %v2530_v15 = vpop.f32.mrb[45].mxu1  ;;  %v2587_v53 = vmax.f32 %v2419_v3, 0.0  ;;  %v2714_v55 = vmul.f32 %v2666_v35, %v2586_v37  ;;  %v2899_v45 = vmul.f32 %v2851_v31, %v2586_v37  ;;  %v2589_v46 = vmax.f32 %v2528_v52, 0.0  ;;  %v2635_v3 = vld [vmem:[%s5184_s4 + $0x48] sm:$0xff] }
 0x430   : > { %v2757_v6 = vadd.f32 %v2756_v36, %v2710_v40  ;;  %v2942_v2 = vadd.f32 %v2941_v61, %v2895_v30  ;;  %v4894_v25 = vpop.f32.mrb[34].mxu0  ;;  %v4901_v59 = vpop.f32.mrb[46].mxu1  ;;  %v2588_v50 = vmax.f32 %v2421_v28, 0.0  ;;  %v2670_v10 = vunpack.c.l.bf16 %v2633_v7 }
 0x431   : > { %v4903_v26 = vpop.f32.mrb[35].mxu0  ;;  %v2533_v56 = vpop.f32.mrb[47].mxu1  ;;  %v2715_v22 = vmul.f32 %v2667_v58, %v2587_v53  ;;  %v2900_v21 = vmul.f32 %v2852_v16, %v2587_v53  ;;  %v2590_v9 = vmax.f32 %v4894_v25, 0.0  ;;  %v2855_v40 = vunpack.c.l.bf16 %v3288_v32 }
 0x432   : > { %v2758_v8 = vadd.f32 %v2757_v6, %v2711_v49  ;;  %v2943_v5 = vadd.f32 %v2942_v2, %v2896_v47  ;;  %v2716_v0 = vmul.f32 %v2668_v54, %v2588_v50  ;;  %v2717_v60 = vmul.f32 %v2669_v13, %v2589_v46  ;;  %v4938_v6 = vld [vmem:[%s5184_s4 + $0x50] ss:$12 sps:$4 sm:$0xff]  }
 0x433   : > { %v2901_v30 = vmul.f32 %v2853_v23, %v2588_v50  ;;  %v2902_v47 = vmul.f32 %v2854_v4, %v2589_v46  ;;  %v2671_v51 = vunpack.c.h.bf16 %v2633_v7  ;;  %v2856_v52 = vunpack.c.h.bf16 %v3288_v32  ;;  %v4943_v2 = vld [vmem:[%s5184_s4 + $0x110] ss:$12 sps:$4 sm:$0xff]   ;;  %v3292_v32 = vld [vmem:[%s5184_s4 + $0x114] sm:$0xff] }
 0x434   : > { %v2759_v62 = vadd.f32 %v2758_v8, %v2712_v42  ;;  %v2944_v27 = vadd.f32 %v2943_v5, %v2897_v12  ;;  %v2672_v1 = vunpack.c.h.bf16 %v4891_v24  ;;  %v2591_v28 = vmax.f32 %v4903_v26, 0.0 }
 0x435   : > { %v2857_v15 = vunpack.c.h.bf16 %v4899_v20  ;;  %v2718_v63 = vmul.f32 %v2670_v10, %v2590_v9  ;;  %v2592_v31 = vmax.f32 %v4901_v59, 0.0  ;;  %v2673_v24 = vunpack.c.l.bf16 %v2635_v3 }
 0x436   : > { %v2760_v29 = vadd.f32 %v2759_v62, %v2713_v48  ;;  %v2945_v43 = vadd.f32 %v2944_v27, %v2898_v14  ;;  %v4913_v41 = vpop.f32.mrb[36].mxu0  ;;  %v4915_v18 = vpop.f32.mrb[48].mxu1  ;;  %v2858_v25 = vunpack.c.l.bf16 %v3290_v57  ;;  %v2903_v42 = vmul.f32 %v2855_v40, %v2590_v9 }
 0x437   : > { %v4917_v39 = vpop.f32.mrb[37].mxu0  ;;  %v2538_v19 = vpop.f32.mrb[49].mxu1  ;;  %v2593_v20 = vmax.f32 %v4913_v41, 0.0  ;;  %v2674_v56 = vunpack.c.h.bf16 %v2635_v3  ;;  %v2859_v12 = vunpack.c.h.bf16 %v3290_v57  ;;  %v2675_v8 = vunpack.c.l.bf16 %v4938_v6  ;;  %v4984_v57 = vld [vmem:[%s5184_s4 + $0x68] ss:$12 sps:$4 sm:$0xff]  }
 0x438   : > { %v2761_v17 = vadd.f32 %v2760_v29, %v2714_v55  ;;  %v2946_v34 = vadd.f32 %v2945_v43, %v2899_v45  ;;  %v4919_v38 = vpop.f32.mrb[38].mxu0  ;;  %v4921_v33 = vpop.f32.mrb[50].mxu1  ;;  %v2860_v5 = vunpack.c.l.bf16 %v4943_v2  ;;  %v2719_v54 = vmul.f32 %v2671_v51, %v2591_v28  ;;  %v2637_v45 = vld [vmem:[%s5184_s4 + $0x54] sm:$0xff] }
 0x439   : > { %v4924_v11 = vpop.f32.mrb[39].mxu0  ;;  %v2541_v49 = vpop.f32.mrb[51].mxu1  ;;  %v2904_v23 = vmul.f32 %v2856_v52, %v2591_v28  ;;  %v2720_v62 = vmul.f32 %v2672_v1, %v2592_v31  ;;  %v2905_v27 = vmul.f32 %v2857_v15, %v2592_v31  ;;  %v2594_v55 = vmax.f32 %v4917_v39, 0.0  ;;  %v4993_v15 = vld [vmem:[%s5184_s4 + $0x128] ss:$12 sps:$4 sm:$0xff]  }
 0x43a   : > { %v2762_v36 = vadd.f32 %v2761_v17, %v2715_v22  ;;  %v2947_v61 = vadd.f32 %v2946_v34, %v2900_v21  ;;  %v2595_v50 = vmax.f32 %v4915_v18, 0.0  ;;  %v2721_v22 = vmul.f32 %v2673_v24, %v2593_v20  ;;  %v2639_v49 = vld [vmem:[%s5184_s4 + $0x60] sm:$0xff] }
 0x43b   : > { %v2906_v21 = vmul.f32 %v2858_v25, %v2593_v20  ;;  %v2676_v39 = vunpack.c.l.bf16 %v2637_v45  ;;  %v2722_v17 = vmul.f32 %v2674_v56, %v2594_v55  ;;  %v2596_v34 = vmax.f32 %v4919_v38, 0.0 }
 0x43c   : > { %v2763_v44 = vadd.f32 %v2762_v36, %v2716_v0  ;;  %v2948_v35 = vadd.f32 %v2947_v61, %v2901_v30  ;;  %v2861_v10 = vunpack.c.l.bf16 %v3292_v32  ;;  %v2723_v0 = vmul.f32 %v2675_v8, %v2595_v50  ;;  %v3294_v36 = vld [vmem:[%s5184_s4 + $0x120] sm:$0xff] }
 0x43d   : > { %v2907_v40 = vmul.f32 %v2859_v12, %v2594_v55  ;;  %v2862_v38 = vunpack.c.h.bf16 %v3292_v32  ;;  %v2678_v3 = vunpack.c.h.bf16 %v4938_v6  ;;  %v2863_v28 = vunpack.c.h.bf16 %v4943_v2  ;;  %v2641_v55 = vld [vmem:[%s5184_s4 + $0x6c] sm:$0xff] }
 0x43e   : > { %v2764_v37 = vadd.f32 %v2763_v44, %v2717_v60  ;;  %v2949_v58 = vadd.f32 %v2948_v35, %v2902_v47  ;;  %v4947_v16 = vpop.f32.mrb[40].mxu0  ;;  %v4949_v26 = vpop.f32.mrb[52].mxu1  ;;  %v2908_v60 = vmul.f32 %v2860_v5, %v2595_v50  ;;  %v2677_v47 = vunpack.c.h.bf16 %v2637_v45 }
 0x43f   : > { %v4953_v53 = vpop.f32.mrb[41].mxu0  ;;  %v2546_v59 = vpop.f32.mrb[53].mxu1  ;;  %v2597_v35 = vmax.f32 %v4924_v11, 0.0  ;;  %v2724_v31 = vmul.f32 %v2676_v39, %v2596_v34  ;;  %v2598_v24 = vmax.f32 %v4921_v33, 0.0  ;;  %v2679_v25 = vunpack.c.l.bf16 %v2639_v49 }
 0x440   : > { %v2765_v13 = vadd.f32 %v2764_v37, %v2718_v63  ;;  %v2950_v4 = vadd.f32 %v2949_v58, %v2903_v42  ;;  %v4955_v48 = vpop.f32.mrb[42].mxu0  ;;  %v4957_v14 = vpop.f32.mrb[54].mxu1  ;;  %v2864_v42 = vunpack.c.l.bf16 %v3294_v36  ;;  %v2909_v11 = vmul.f32 %v2861_v10, %v2596_v34 }
 0x441   : > { %v4964_v7 = vpop.f32.mrb[43].mxu0  ;;  %v2549_v46 = vpop.f32.mrb[55].mxu1  ;;  %v2599_v56 = vmax.f32 %v4947_v16, 0.0  ;;  %v2680_v12 = vunpack.c.h.bf16 %v2639_v49  ;;  %v2865_v8 = vunpack.c.h.bf16 %v3294_v36  ;;  %v2681_v5 = vunpack.c.l.bf16 %v4984_v57 }
 0x442   : > { %v2766_v29 = vadd.f32 %v2765_v13, %v2719_v54  ;;  %v2951_v43 = vadd.f32 %v2950_v4, %v2904_v23  ;;  %v2866_v59 = vunpack.c.l.bf16 %v4993_v15  ;;  %v2725_v54 = vmul.f32 %v2677_v47, %v2597_v35 }
 0x443   : > { %v2910_v23 = vmul.f32 %v2862_v38, %v2597_v35  ;;  %v2726_v4 = vmul.f32 %v2678_v3, %v2598_v24  ;;  %v2601_v16 = vmax.f32 %v4949_v26, 0.0  ;;  %v2727_v46 = vmul.f32 %v2679_v25, %v2599_v56  ;;  %v2643_v38 = vld [vmem:[%s5184_s4 + $0x78] sm:$0xff]  ;;  %v5043_v25 = vld [vmem:[%s5184_s4 + $0x140] ss:$12 sps:$4 sm:$0xff]  }
 0x444   : > { %v2767_v41 = vadd.f32 %v2766_v29, %v2720_v62  ;;  %v2952_v19 = vadd.f32 %v2951_v43, %v2905_v27  ;;  %v2911_v62 = vmul.f32 %v2863_v28, %v2598_v24  ;;  %v2600_v27 = vmax.f32 %v4953_v53, 0.0  ;;  %v3296_v43 = vld [vmem:[%s5184_s4 + $0x12c] sm:$0xff]  ;;  %v3298_v3 = vld [vmem:[%s5184_s4 + $0x138] sm:$0xff] }
 0x445   : > { %v2912_v29 = vmul.f32 %v2864_v42, %v2599_v56  ;;  %v2682_v39 = vunpack.c.l.bf16 %v2641_v55  ;;  %v2602_v10 = vmax.f32 %v4955_v48, 0.0  ;;  %v2914_v47 = vmul.f32 %v2866_v59, %v2601_v16  ;;  %v5038_v24 = vld [vmem:[%s5184_s4 + $0x80] ss:$12 sps:$4 sm:$0xff]  }
 0x446   : > { %v2768_v18 = vadd.f32 %v2767_v41, %v2721_v22  ;;  %v2953_v9 = vadd.f32 %v2952_v19, %v2906_v21  ;;  %v4976_v61 = vpop.f32.mrb[44].mxu0  ;;  %v4978_v30 = vpop.f32.mrb[56].mxu1  ;;  %v2728_v34 = vmul.f32 %v2680_v12, %v2600_v27  ;;  %v2913_v36 = vmul.f32 %v2865_v8, %v2600_v27 }
 0x447   : > { %v4986_v51 = vpop.f32.mrb[45].mxu0  ;;  %v2554_v52 = vpop.f32.mrb[57].mxu1  ;;  %v2684_v48 = vunpack.c.h.bf16 %v4984_v57  ;;  %v2603_v28 = vmax.f32 %v4964_v7, 0.0  ;;  %v2730_v42 = vmul.f32 %v2682_v39, %v2602_v10  ;;  %v2685_v57 = vunpack.c.l.bf16 %v2643_v38 }
 0x448   : > { %v2769_v1 = vadd.f32 %v2768_v18, %v2722_v17  ;;  %v2954_v44 = vadd.f32 %v2953_v9, %v2907_v40  ;;  %v4995_v6 = vpop.f32.mrb[46].mxu0  ;;  %v4997_v63 = vpop.f32.mrb[58].mxu1  ;;  %v2729_v18 = vmul.f32 %v2681_v5, %v2601_v16  ;;  %v2683_v52 = vunpack.c.h.bf16 %v2641_v55 }
 0x449   : > { %v5000_v37 = vpop.f32.mrb[47].mxu0  ;;  %v2557_v58 = vpop.f32.mrb[59].mxu1  ;;  %v2686_v8 = vunpack.c.h.bf16 %v2643_v38  ;;  %v2871_v5 = vunpack.c.h.bf16 %v3298_v3  ;;  %v2687_v59 = vunpack.c.l.bf16 %v5038_v24 }
 0x44a   : > { %v2770_v20 = vadd.f32 %v2769_v1, %v2723_v0  ;;  %v2955_v2 = vadd.f32 %v2954_v44, %v2908_v60  ;;  %v2867_v0 = vunpack.c.l.bf16 %v3296_v43  ;;  %v2868_v1 = vunpack.c.h.bf16 %v3296_v43 }
 0x44b   : > { %v2604_v58 = vmax.f32 %v4957_v14, 0.0 }
 0x44c   : > { %v2771_v13 = vadd.f32 %v2770_v20, %v2724_v31  ;;  %v2956_v33 = vadd.f32 %v2955_v2, %v2909_v11  ;;  %v2869_v31 = vunpack.c.h.bf16 %v4993_v15  ;;  %v2870_v11 = vunpack.c.l.bf16 %v3298_v3  ;;  %v2647_v3 = vld [vmem:[%s5184_s4 + $0x90] sm:$0xff] }
 0x44d   : > { %v2915_v20 = vmul.f32 %v2867_v0, %v2602_v10  ;;  %v2605_v15 = vmax.f32 %v4976_v61, 0.0  ;;  %v2732_v55 = vmul.f32 %v2684_v48, %v2604_v58 }
 0x44e   : > { %v2772_v45 = vadd.f32 %v2771_v13, %v2725_v54  ;;  %v2957_v50 = vadd.f32 %v2956_v33, %v2910_v23  ;;  %v5013_v22 = vpop.f32.mrb[48].mxu0  ;;  %v5015_v21 = vpop.f32.mrb[60].mxu1  ;;  %v2872_v54 = vunpack.c.l.bf16 %v5043_v25  ;;  %v2731_v13 = vmul.f32 %v2683_v52, %v2603_v28  ;;  %v3302_v52 = vld [vmem:[%s5184_s4 + $0x150] sm:$0xff] }
 0x44f   : > { %v5017_v32 = vpop.f32.mrb[49].mxu0  ;;  %v2562_v53 = vpop.f32.mrb[61].mxu1  ;;  %v2916_v33 = vmul.f32 %v2868_v1, %v2603_v28  ;;  %v2917_v16 = vmul.f32 %v2869_v31, %v2604_v58  ;;  %v2918_v39 = vmul.f32 %v2870_v11, %v2605_v15  ;;  %v2609_v28 = vmax.f32 %v5000_v37, 0.0  ;;  %v5087_v58 = vld [vmem:[%s5184_s4 + $0x158] ss:$12 sps:$4 sm:$0xff]  }
 0x450   : > { %v2773_v41 = vadd.f32 %v2772_v45, %v2726_v4  ;;  %v2958_v19 = vadd.f32 %v2957_v50, %v2911_v62  ;;  %v5019_v17 = vpop.f32.mrb[50].mxu0  ;;  %v5021_v26 = vpop.f32.mrb[62].mxu1  ;;  %v2606_v45 = vmax.f32 %v4986_v51, 0.0  ;;  %v2645_v50 = vld [vmem:[%s5184_s4 + $0x84] sm:$0xff]  ;;  %v2875_v31 = vunpack.c.h.bf16 %v5043_v25 }
 0x451   : > { %v5024_v9 = vpop.f32.mrb[51].mxu0  ;;  %v2565_v40 = vpop.f32.mrb[63].mxu1  ;;  %v2688_v51 = vunpack.c.l.bf16 %v2645_v50  ;;  %v2689_v1 = vunpack.c.h.bf16 %v2645_v50  ;;  %v2610_v11 = vmax.f32 %v4997_v63, 0.0  ;;  %v2611_v25 = vmax.f32 %v5013_v22, 0.0 }
 0x452   : > { %v2774_v60 = vadd.f32 %v2773_v41, %v2727_v46  ;;  %v2959_v49 = vadd.f32 %v2958_v19, %v2912_v29  ;;  %v2607_v46 = vmax.f32 %v4978_v30, 0.0  ;;  %v2733_v19 = vmul.f32 %v2685_v57, %v2605_v15 }
 0x453   : > { %v2608_v40 = vmax.f32 %v4995_v6, 0.0  ;;  %v2692_v15 = vunpack.c.h.bf16 %v2647_v3  ;;  %v2612_v63 = vmax.f32 %v5017_v32, 0.0  ;;  %v2613_v22 = vmax.f32 %v5015_v21, 0.0 }
 0x454   : > { %v2775_v44 = vadd.f32 %v2774_v60, %v2728_v34  ;;  %v2960_v35 = vadd.f32 %v2959_v49, %v2913_v36  ;;  %v3300_v34 = vld [vmem:[%s5184_s4 + $0x144] sm:$0xff]  ;;  %v2735_v49 = vmul.f32 %v2687_v59, %v2607_v46  ;;  %v2920_v38 = vmul.f32 %v2872_v54, %v2607_v46 }
 0x455   : > { %v2873_v60 = vunpack.c.l.bf16 %v3300_v34  ;;  %v2874_v48 = vunpack.c.h.bf16 %v3300_v34  ;;  %v2736_v57 = vmul.f32 %v2688_v51, %v2608_v40  ;;  %v2878_v59 = vunpack.c.l.bf16 %v5087_v58 }
 0x456   : > { %v2776_v2 = vadd.f32 %v2775_v44, %v2729_v18  ;;  %v2961_v7 = vadd.f32 %v2960_v35, %v2914_v47  ;;  %v5047_v56 = vpop.f32.mrb[52].mxu0  ;;  %v5049_v12 = vpop.f32.mrb[64].mxu1  ;;  %v2734_v18 = vmul.f32 %v2686_v8, %v2606_v45  ;;  %v2919_v47 = vmul.f32 %v2871_v5, %v2606_v45 }
 0x457   : > { %v5053_v23 = vpop.f32.mrb[53].mxu0  ;;  %v2570_v14 = vpop.f32.mrb[65].mxu1  ;;  %v2690_v44 = vunpack.c.h.bf16 %v5038_v24  ;;  %v2691_v24 = vunpack.c.l.bf16 %v2647_v3  ;;  %v2877_v8 = vunpack.c.h.bf16 %v3302_v52  ;;  %v2737_v54 = vmul.f32 %v2689_v1, %v2609_v28  ;;  %v3307_v1 = vld [vmem:[%s5184_s4 + $0x170] ss:$12 sps:$4 sm:$0xff]  }
 0x458   : > { %v2777_v4 = vadd.f32 %v2776_v2, %v2730_v42  ;;  %v2962_v62 = vadd.f32 %v2961_v7, %v2915_v20  ;;  %v5055_v27 = vpop.f32.mrb[54].mxu0  ;;  %v5057_v61 = vpop.f32.mrb[66].mxu1  ;;  %v5082_v42 = vld [vmem:[%s5184_s4 + $0x98] ss:$12 sps:$4 sm:$0xff]   ;;  %v2876_v20 = vunpack.c.l.bf16 %v3302_v52  ;;  %v2921_v2 = vmul.f32 %v2873_v60, %v2608_v40  ;;  %v2651_v40 = vld [vmem:[%s5184_s4 + $0xa8] sm:$0xff] }
 0x459   : > { %v5064_v29 = vpop.f32.mrb[55].mxu0  ;;  %v2573_v43 = vpop.f32.mrb[67].mxu1  ;;  %v2693_v5 = vunpack.c.l.bf16 %v5082_v42  ;;  %v2922_v14 = vmul.f32 %v2874_v48, %v2609_v28  ;;  %v2739_v50 = vmul.f32 %v2691_v24, %v2611_v25  ;;  %v2614_v32 = vmax.f32 %v5019_v17, 0.0  ;;  %v3306_v60 = vld [vmem:[%s5184_s4 + $0x168] sm:$0xff]  ;;  %v2652_v52 = vld [vmem:[%s5184_s4 + $0xb0] ss:$12 sps:$4 sm:$0xff]  }
 0x45a   : > { %v2778_v53 = vadd.f32 %v2777_v4, %v2731_v13  ;;  %v2963_v41 = vadd.f32 %v2962_v62, %v2916_v33  ;;  %v2738_v4 = vmul.f32 %v2690_v44, %v2610_v11  ;;  %v2923_v62 = vmul.f32 %v2875_v31, %v2610_v11  ;;  %v3304_v43 = vld [vmem:[%s5184_s4 + $0x15c] sm:$0xff] }
 0x45b   : > { %v2924_v46 = vmul.f32 %v2876_v20, %v2611_v25  ;;  %v2879_v34 = vunpack.c.l.bf16 %v3304_v43  ;;  %v2926_v21 = vmul.f32 %v2878_v59, %v2613_v22  ;;  %v2881_v3 = vunpack.c.h.bf16 %v5087_v58 }
 0x45c   : > { %v2779_v10 = vadd.f32 %v2778_v53, %v2732_v55  ;;  %v2964_v0 = vadd.f32 %v2963_v41, %v2917_v16  ;;  %v2649_v55 = vld [vmem:[%s5184_s4 + $0x9c] sm:$0xff]  ;;  %v2616_v44 = vmax.f32 %v5021_v26, 0.0  ;;  %v2883_v58 = vunpack.c.h.bf16 %v3306_v60  ;;  %v2653_v26 = vld [vmem:[%s5184_s4 + $0xb4] sm:$0xff] }
 0x45d   : > { %v2927_v28 = vmul.f32 %v2879_v34, %v2614_v32  ;;  %v2699_v11 = vunpack.c.l.bf16 %v2652_v52  ;;  %v2884_v24 = vunpack.c.l.bf16 %v3307_v1  ;;  %v2887_v34 = vunpack.c.h.bf16 %v3307_v1 }
 0x45e   : > { %v2780_v30 = vadd.f32 %v2779_v10, %v2733_v19  ;;  %v2965_v36 = vadd.f32 %v2964_v0, %v2918_v39  ;;  %v2694_v19 = vunpack.c.l.bf16 %v2649_v55  ;;  %v2740_v39 = vmul.f32 %v2692_v15, %v2612_v63 }
 0x45f   : > { %v2741_v10 = vmul.f32 %v2693_v5, %v2613_v22  ;;  %v2929_v15 = vmul.f32 %v2881_v3, %v2616_v44  ;;  %v2619_v5 = vmax.f32 %v5049_v12, 0.0 }
 0x460   : > { %v2781_v35 = vadd.f32 %v2780_v30, %v2734_v18  ;;  %v2966_v6 = vadd.f32 %v2965_v36, %v2919_v47  ;;  %v2925_v18 = vmul.f32 %v2877_v8, %v2612_v63  ;;  %v2880_v30 = vunpack.c.h.bf16 %v3304_v43 }
 0x461   : > { %v2696_v36 = vunpack.c.h.bf16 %v5082_v42  ;;  %v2742_v48 = vmul.f32 %v2694_v19, %v2614_v32  ;;  %v2618_v8 = vmax.f32 %v5053_v23, 0.0  ;;  %v2620_v23 = vmax.f32 %v5055_v27, 0.0 }
 0x462   : > { %v2782_v7 = vadd.f32 %v2781_v35, %v2735_v49  ;;  %v2967_v37 = vadd.f32 %v2966_v6, %v2920_v38  ;;  %v2695_v49 = vunpack.c.h.bf16 %v2649_v55  ;;  %v2615_v38 = vmax.f32 %v5024_v9, 0.0 }
 0x463   : > { %v2697_v35 = vunpack.c.l.bf16 %v2651_v40  ;;  %v2882_v6 = vunpack.c.l.bf16 %v3306_v60  ;;  %v2617_v9 = vmax.f32 %v5047_v56, 0.0  ;;  %v2744_v25 = vmul.f32 %v2696_v36, %v2616_v44 }
 0x464   : > { %v2783_v13 = vadd.f32 %v2782_v7, %v2736_v57  ;;  %v2968_v33 = vadd.f32 %v2967_v37, %v2921_v2  ;;  %v2698_v57 = vunpack.c.h.bf16 %v2651_v40  ;;  %v2743_v20 = vmul.f32 %v2695_v49, %v2615_v38 }
 0x465   : > { %v2928_v2 = vmul.f32 %v2880_v30, %v2615_v38  ;;  %v2747_v22 = vmul.f32 %v2699_v11, %v2619_v5  ;;  %v2932_v12 = vmul.f32 %v2884_v24, %v2619_v5  ;;  %v2702_v32 = vunpack.c.h.bf16 %v2652_v52  ;;  %v2996_v11 = vld [vmem:[%s5185_s5] sm:$0x1] }
 0x466   : > { %v2784_v16 = vadd.f32 %v2783_v13, %v2737_v54  ;;  %v2969_v45 = vadd.f32 %v2968_v33, %v2922_v14  ;;  %v2745_v54 = vmul.f32 %v2697_v35, %v2617_v9  ;;  %v2930_v14 = vmul.f32 %v2882_v6, %v2617_v9  ;;  %v3308_v13 = vld [vmem:[%s5184_s4 + $0x174] sm:$0xff] }
 0x467   : > { %v2746_v63 = vmul.f32 %v2698_v57, %v2618_v8  ;;  %v2885_v55 = vunpack.c.l.bf16 %v3308_v13  ;;  %v2886_v19 = vunpack.c.h.bf16 %v3308_v13  ;;  %v2622_v27 = vmax.f32 %v5057_v61, 0.0 }
 0x468   : > { %v2785_v53 = vadd.f32 %v2784_v16, %v2738_v4  ;;  %v2970_v41 = vadd.f32 %v2969_v45, %v2923_v62  ;;  %v2700_v62 = vunpack.c.l.bf16 %v2653_v26 }
 0x469   : > { %v2750_v49 = vmul.f32 %v2702_v32, %v2622_v27  ;;  %v2935_v30 = vmul.f32 %v2887_v34, %v2622_v27 }
 0x46a   : > { %v2786_v0 = vadd.f32 %v2785_v53, %v2739_v50  ;;  %v2971_v51 = vadd.f32 %v2970_v41, %v2924_v46  ;;  %v2931_v50 = vmul.f32 %v2883_v58, %v2618_v8  ;;  %v2701_v46 = vunpack.c.h.bf16 %v2653_v26 }
 0x46b   : > { %v2621_v41 = vmax.f32 %v5064_v29, 0.0 }
 0x46c   : > { %v2787_v47 = vadd.f32 %v2786_v0, %v2740_v39  ;;  %v2972_v17 = vadd.f32 %v2971_v51, %v2925_v18  ;;  %v2748_v39 = vmul.f32 %v2700_v62, %v2620_v23 }
 0x46d   : > { %v2749_v18 = vmul.f32 %v2701_v46, %v2621_v41 }
 0x46e   : > { %v2788_v31 = vadd.f32 %v2787_v47, %v2741_v10  ;;  %v2973_v42 = vadd.f32 %v2972_v17, %v2926_v21  ;;  %v2933_v10 = vmul.f32 %v2885_v55, %v2620_v23  ;;  %v2934_v21 = vmul.f32 %v2886_v19, %v2621_v41 }
 0x470   : > { %v2789_v7 = vadd.f32 %v2788_v31, %v2742_v48  ;;  %v2974_v37 = vadd.f32 %v2973_v42, %v2927_v28 }
 0x472   : > { %v2790_v59 = vadd.f32 %v2789_v7, %v2743_v20  ;;  %v2975_v56 = vadd.f32 %v2974_v37, %v2928_v2 }
 0x474   : > { %v2791_v33 = vadd.f32 %v2790_v59, %v2744_v25  ;;  %v2976_v4 = vadd.f32 %v2975_v56, %v2929_v15 }
 0x476   : > { %v2792_v16 = vadd.f32 %v2791_v33, %v2745_v54  ;;  %v2977_v45 = vadd.f32 %v2976_v4, %v2930_v14 }
 0x478   : > { %v2793_v43 = vadd.f32 %v2792_v16, %v2746_v63  ;;  %v2978_v53 = vadd.f32 %v2977_v45, %v2931_v50 }
 0x47a   : > { %v2794_v0 = vadd.f32 %v2793_v43, %v2747_v22  ;;  %v2979_v51 = vadd.f32 %v2978_v53, %v2932_v12 }
 0x47c   : > { %v2980_v40 = vadd.f32 %v2979_v51, %v2933_v10  ;;  %v2795_v60 = vadd.f32 %v2794_v0, %v2748_v39 }
 0x47e   : > { %v2981_v36 = vadd.f32 %v2980_v40, %v2934_v21  ;;  %v2796_v47 = vadd.f32 %v2795_v60, %v2749_v18 }
 0x480   : > { %v2982_v17 = vadd.f32 %v2981_v36, %v2935_v30  ;;  %v2797_v38 = vadd.f32 %v2796_v47, %v2750_v49 }
 0x482   : > { %2983 = vadd.xlane.f32.xlu1 %v2982_v17  ;;  %2798 = vadd.xlane.f32.xlu0 %v2797_v38 }
 0x50f   : > { %v2984_v29 = vpop.xlane.xlu1 %2983  ;;  %v2799_v3 = vpop.xlane.xlu0 %2798 }
 0x510   : > { %v2985_v52 = vrot.slane %v2984_v29, 4  ;;  %v2800_v1 = vrot.slane %v2799_v3, 4 }
 0x512   : > { %v2986_v48 = vadd.f32 %v2985_v52, %v2984_v29  ;;  %v2801_v61 = vadd.f32 %v2800_v1, %v2799_v3 }
 0x514   : > { %v2987_v44 = vrot.slane %v2986_v48, 2  ;;  %v2802_v35 = vrot.slane %v2801_v61, 2 }
 0x516   : > { %v2988_v6 = vadd.f32 %v2987_v44, %v2986_v48  ;;  %v2803_v28 = vadd.f32 %v2802_v35, %v2801_v61 }
 0x518   : > { %v2804_v31 = vrot.slane %v2803_v28, 1  ;;  %v2989_v42 = vrot.slane %v2988_v6, 1 }
 0x51a   : > { %v2805_v9 = vadd.f32 %v2804_v31, %v2803_v28  ;;  %v2990_v57 = vadd.f32 %v2989_v42, %v2988_v6 }
 0x51c   : > { %3374 = vpush %v2805_v9 }
 0x51d   : > { %3376 = vpush %v2990_v57 }
 0x54d   : > { %s3375_s12 = spop %3374 }
 0x54e   : > { %v2992_v58 = vstv %s3375_s12  ;;  %s3377_s14 = spop %3376 }
 0x54f   : > { %v2993_v24 = vstv %s3377_s14 }
 0x550   : > { %v2995_v20 = vsel %vm2994_vm1, %v2992_v58, %v2993_v24 }
 0x551   : > { %v2997_v2 = vadd.f32 %v2996_v11, %v2995_v20 }
 0x553   : > { %2999 = vst.msk [vmem:[%s256_s17] sm:$0x1] %vm2998_vm2, %v2997_v2 }
 0x554   : > { %3741 = shalt.err (!%p3738_p7)
}
 0x555   : > { %s3742_s11 = scalar_lea.hbm %s5138_s26, 16  ;;  %s3746_s14 = scalar_lea.hbm %s5186_s6, 32 }
 0x556   : > { %p3743_p8 = scmp.ne.s32.totalorder %s5138_s26, %s3742_s11  ;;  %p3747_p1 = scmp.lt.u32.totalorder %s5138_s26, %s5186_s6 }
 0x557   : > { %p3748_p0 = scmp.lt.u32.totalorder %s3746_s14, %s3742_s11  ;;  %p3750_p6 = scmp.lt.u32.totalorder %s3742_s11, %s5138_s26 }
 0x558   : > { %p3744_p11 = pnand %p3743_p8, %p5424_p9 }
 0x559   : > { %p3749_p5 = por %p3748_p0, %p3747_p1 }
 0x55a   : > { %p3745_p13 = pneg %p3744_p11 }
 0x55b   : > { %p3751_p10 = por %p3750_p6, %p3749_p5 }
 0x55d   : > { %p3752_p12 = pnand %p3751_p10, %p3745_p13 }
 0x55f   : > { %3755 = shalt.err (!%p3752_p12)
}
 0x560   : > { %3382 = dma.vmem_to_hbm [thread:$0]  (%p5424_p9), %s5140_s18, 16, %s5138_s26, %s3001_s25  }
 0x561 PF: > { %p3394_p2 = scmp.ge.s32.totalorder %s3794_s24, 2  ;;  %s3025_s17 = sand.u32 1, %s3782_s21  }
 0x562   : > { %p5425_p3 = scmp.ne.s32.totalorder %s5270_s8, 0  ;;  %s3026_s19 = scalar_lea.sflag [#allocation5], %s3025_s17 }
 0x564   : > { %p3389_p4 = pnand %p3394_p2, %p5425_p3 }
 0x566   : > { %3777 = dma.done.wait (!%p3389_p4), %s3026_s19, 16  }
 0x567   : > { %3779 = vsyncadd (!%p3389_p4), %s3026_s19, 4294967280  ;;  %p17_p7 = scmp.ge.s32.totalorder %s3861_s27, 4   ;;  %s5426_s21 = smov %s3786_s22 }
 0x568   : > { %s5427_s22 = smov %s3790_s23  ;;  %s5428_s23 = smov %s3872_s30 }
 0x569   : > { %s5429_s24 = smov %s3861_s27  ;;  %19 = sbr.rel (!%p17_p7) target bundleno = 4 (0x4), region = 87 }
 0x570   :  { %3030 = vsyncpa [#allocation4], 1 }
 0x571   :  { %3032 = vsyncpa [#allocation4 + $0x1], 1 }
 0x572   :  { %3033 = vsyncpa [#allocation5], 1 }
 0x573   :  { %3035 = vsyncpa [#allocation5 + $0x1], 1 }

</bundles_post_ra>
